<compile_context>
chip_gen: v5e
topology: v5e:2x2
jax: 0.10.0
libtpu: 0.0.40
codegen_flags: <defaults>
</compile_context>

<pallas_src>
import functools

import jax
import jax.numpy as jnp
from jax.experimental import pallas as pl
from jax.experimental.pallas import tpu as pltpu
from jax.scipy.linalg import block_diag


# --------------------------- Pallas kernels ---------------------------------

def _gap_gate_kernel(x_ref, fx_ref, w1_ref, s1_ref, b1_ref,
                     w2_ref, s2_ref, b2_ref, gate_ref, sum_ref, *, inv_hw):
    # Tiled reduction over the H*W axis + tiny grouped-1x1 gate head.
    #   x_ref, fx_ref : (N, TILE_HW, C) spatial tile (streamed, double-buffered)
    #   w1/w2         : (C, C) block-diagonal dense weights (grouped 1x1 conv)
    #   s*/b*         : (1, C) folded BN scale / bias
    #   gate_ref      : (N, C) output (resident across the "arbitrary" axis)
    #   sum_ref       : (N, C) f32 VMEM accumulator
    j = pl.program_id(0)

    @pl.when(j == 0)
    def _():
        sum_ref[...] = jnp.zeros_like(sum_ref)

    # Partial sum of (x + fx) over this spatial tile: (N, TILE_HW, C) -> (N, C)
    sum_ref[...] += jnp.sum(x_ref[...] + fx_ref[...], axis=1)

    @pl.when(j == pl.num_programs(0) - 1)
    def _():
        # fuse = adaptive_avg_pool2d(x, 1) + adaptive_avg_pool2d(fx, 1)
        fuse = sum_ref[...] * inv_hw                                   # (N, C)
        h = jnp.dot(fuse, w1_ref[...], preferred_element_type=jnp.float32)
        h = jnp.maximum(h * s1_ref[...] + b1_ref[...], 0.0)            # bn1+ReLU
        h = jnp.dot(h, w2_ref[...], preferred_element_type=jnp.float32)
        h = h * s2_ref[...] + b2_ref[...]                              # bn2
        gate_ref[...] = jax.nn.sigmoid(h)


def _sk_apply_kernel(x_ref, fx_ref, gate_ref, o_ref):
    # Elementwise gate application:  out = (fx - x) * sk + x
    #   x_ref, fx_ref, o_ref : (1, TILE_HW, C)
    #   gate_ref             : (N, C) full gate, resident in VMEM
    b = pl.program_id(0)
    sk = gate_ref[pl.ds(b, 1), :]            # (1, C)
    sk = sk[:, None, :]                      # (1, 1, C)
    x = x_ref[...]
    fx = fx_ref[...]
    o_ref[...] = (fx - x) * sk + x


# --------------------------- wrapper -----------------------------------------

def _pick_tile(total, cap=512):
    """Largest multiple of 8 that divides `total` and is <= cap."""
    assert total % 8 == 0, "H*W must be a multiple of 8"
    best = 8
    t = 8
    limit = min(total, cap)
    while t <= limit:
        if total % t == 0:
            best = t
        t += 8
    return best


def _vmem_limit(bytes_needed):
    # 2x headroom, floored at 8 MiB, capped at 32 MiB (safe on v5e/v6e/v7x).
    return int(min(max(2 * bytes_needed, 8 * 1024 * 1024), 32 * 1024 * 1024))


def sk_layer_forward(x_nchw, fx_nchw, params, *, tile_hw=None):
    """SKLayer.forward (stride == 1): (fx - x) * sigmoid(sk_proj(GAP(x)+GAP(fx))) + x."""
    n, c, h, w = x_nchw.shape
    hw = h * w
    x = jnp.transpose(x_nchw, (0, 2, 3, 1)).reshape(n, hw, c).astype(jnp.float32)
    fx = jnp.transpose(fx_nchw, (0, 2, 3, 1)).reshape(n, hw, c).astype(jnp.float32)

    if tile_hw is None:
        tile_hw = _pick_tile(hw, 512)
    n_hw = hw // tile_hw

    f32 = 4
    # ---- pass 1: GAP fuse + grouped-1x1 gate head -> (N, C) gate ------------
    bytes_p1 = (2 * 2 * n * tile_hw * c * f32          # x, fx tiles, double-buffered
                + 2 * c * c * f32 + 6 * c * f32        # weights, scale/bias
                + 2 * n * c * f32)                     # output + accumulator
    gate = pl.pallas_call(
        functools.partial(_gap_gate_kernel, inv_hw=1.0 / float(hw)),
        out_shape=jax.ShapeDtypeStruct((n, c), jnp.float32),
        grid_spec=pltpu.PrefetchScalarGridSpec(
            num_scalar_prefetch=0,
            grid=(n_hw,),
            in_specs=[
                pl.BlockSpec((n, tile_hw, c), lambda j: (0, j, 0)),   # x
                pl.BlockSpec((n, tile_hw, c), lambda j: (0, j, 0)),   # fx
                pl.BlockSpec((c, c), lambda j: (0, 0)),               # w1
                pl.BlockSpec((1, c), lambda j: (0, 0)),               # s1
                pl.BlockSpec((1, c), lambda j: (0, 0)),               # b1
                pl.BlockSpec((c, c), lambda j: (0, 0)),               # w2
                pl.BlockSpec((1, c), lambda j: (0, 0)),               # s2
                pl.BlockSpec((1, c), lambda j: (0, 0)),               # b2
            ],
            out_specs=pl.BlockSpec((n, c), lambda j: (0, 0)),
            scratch_shapes=[pltpu.VMEM((n, c), jnp.float32)],
        ),
        compiler_params=pltpu.CompilerParams(
            dimension_semantics=("arbitrary",),          # reduction axis
            vmem_limit_bytes=_vmem_limit(bytes_p1)),
    )(x, fx, params["w1"], params["s1"], params["b1"],
      params["w2"], params["s2"], params["b2"])

    # ---- pass 2: out = (fx - x) * sk + x, streamed elementwise --------------
    bytes_p2 = (3 * 2 * tile_hw * c * f32               # x, fx, out tiles, dbl-buf
                + 2 * n * c * f32)                       # gate
    out = pl.pallas_call(
        _sk_apply_kernel,
        out_shape=jax.ShapeDtypeStruct((n, hw, c), jnp.float32),
        grid_spec=pltpu.PrefetchScalarGridSpec(
            num_scalar_prefetch=0,
            grid=(n, n_hw),
            in_specs=[
                pl.BlockSpec((1, tile_hw, c), lambda b, j: (b, j, 0)),  # x
                pl.BlockSpec((1, tile_hw, c), lambda b, j: (b, j, 0)),  # fx
                pl.BlockSpec((n, c), lambda b, j: (0, 0)),              # gate
            ],
            out_specs=pl.BlockSpec((1, tile_hw, c), lambda b, j: (b, j, 0)),
        ),
        compiler_params=pltpu.CompilerParams(
            dimension_semantics=("parallel", "parallel"),  # megacore-shardable
            vmem_limit_bytes=_vmem_limit(bytes_p2)),
    )(x, fx, gate)

    return out.reshape(n, h, w, c).transpose(0, 3, 1, 2)   # NHWC -> NCHW


# --------------------------- parameter construction --------------------------

def _bn_fold(key, c, eps=1e-5):
    k1, k2, k3, k4 = jax.random.split(key, 4)
    gamma = 1.0 + 0.1 * jax.random.normal(k1, (c,), jnp.float32)
    beta = 0.1 * jax.random.normal(k2, (c,), jnp.float32)
    mean = 0.1 * jax.random.normal(k3, (c,), jnp.float32)
    var = 1.0 + 0.1 * jnp.abs(jax.random.normal(k4, (c,), jnp.float32))
    scale = gamma / jnp.sqrt(var + eps)
    bias = beta - mean * scale
    return scale.reshape(1, c), bias.reshape(1, c)


def _grouped_1x1_dense(key, channels, groups):
    # Grouped 1x1 conv realised as a dense (C, C) block-diagonal matrix.
    gs = channels // groups
    w = 0.1 * jax.random.normal(key, (groups, gs, gs), jnp.float32)
    return block_diag(*[w[g] for g in range(groups)])


def init_sk_params(key, inplanes, sk_groups):
    assert inplanes % sk_groups == 0
    k = jax.random.split(key, 4)
    p = {}
    p["w1"] = _grouped_1x1_dense(k[0], inplanes, sk_groups)
    p["s1"], p["b1"] = _bn_fold(k[1], inplanes)
    p["w2"] = _grouped_1x1_dense(k[2], inplanes, sk_groups)
    p["s2"], p["b2"] = _bn_fold(k[3], inplanes)
    return p


# --------------------------- pure-JAX reference -------------------------------

def sk_layer_reference(x_nchw, fx_nchw, p):
    x = x_nchw.astype(jnp.float32)
    fx = fx_nchw.astype(jnp.float32)
    fuse = jnp.mean(x, axis=(2, 3)) + jnp.mean(fx, axis=(2, 3))        # (N, C)
    h = jnp.maximum((fuse @ p["w1"]) * p["s1"] + p["b1"], 0.0)
    gate = jax.nn.sigmoid((h @ p["w2"]) * p["s2"] + p["b2"])           # (N, C)
    gate4 = gate[:, :, None, None]
    return (fx - x) * gate4 + x


# --------------------------- main ---------------------------------------------

if __name__ == "__main__":
    # stride == 1 configuration (sk_downsample is None).
    N, C, H, W = 2, 128, 32, 32     # C = 128 keeps every store lane-dense
    sk_groups = 8                   # must divide C (module default 72 needs C % 72 == 0)

    key = jax.random.PRNGKey(0)
    kx, kf, kp = jax.random.split(key, 3)
    x = jax.random.normal(kx, (N, C, H, W), jnp.float32)
    fx = jax.random.normal(kf, (N, C, H, W), jnp.float32)
    params = init_sk_params(kp, C, sk_groups)

    fwd = jax.jit(sk_layer_forward)
    out = jax.block_until_ready(fwd(x, fx, params))

    assert out.shape == (N, C, H, W), out.shape
    assert bool(jnp.all(jnp.isfinite(out)))

    ref = sk_layer_reference(x, fx, params)
    max_err = float(jnp.max(jnp.abs(out - ref)))
    assert bool(jnp.allclose(out, ref, atol=1e-3, rtol=1e-3)), max_err

    print("KERNEL_OK")
</pallas_src>

<mosaic_0001>
module attributes {stable_mosaic.version = 11 : i64} {
  func.func @_sk_apply_kernel(%arg0: i32, %arg1: i32, %arg2: memref<1x512x128xf32, #tpu.memory_space<vmem>>, %arg3: memref<1x512x128xf32, #tpu.memory_space<vmem>>, %arg4: memref<2x128xf32, #tpu.memory_space<vmem>>, %arg5: memref<1x512x128xf32, #tpu.memory_space<vmem>>) attributes {dimension_semantics = [#tpu.dimension_semantics<parallel>, #tpu.dimension_semantics<parallel>], iteration_bounds = array<i64: 2, 2>, scalar_prefetch = 0 : i64, scratch_operands = 0 : i64, tpu.core_type = #tpu.core_type<tc>, window_params = [{transform_indices = @transform_0, window_bounds = array<i64: 1, 512, 128>}, {transform_indices = @transform_1, window_bounds = array<i64: 1, 512, 128>}, {pipeline_mode = #tpu.pipeline_mode<synchronous>, transform_indices = @transform_2, window_bounds = array<i64: 2, 128>}, {transform_indices = @transform_3, window_bounds = array<i64: 1, 512, 128>}]} {
    %0 = arith.index_cast %arg0 : i32 to index
    %c0 = arith.constant 0 : index
    %1 = vector.load %arg4[%0, %c0] : memref<2x128xf32, #tpu.memory_space<vmem>>, vector<1x128xf32>
    %2 = vector.shape_cast %1 : vector<1x128xf32> to vector<1x1x128xf32>
    %c0_0 = arith.constant 0 : index
    %c0_1 = arith.constant 0 : index
    %c0_2 = arith.constant 0 : index
    %3 = vector.load %arg2[%c0_0, %c0_1, %c0_2] : memref<1x512x128xf32, #tpu.memory_space<vmem>>, vector<1x512x128xf32>
    %c0_3 = arith.constant 0 : index
    %c0_4 = arith.constant 0 : index
    %c0_5 = arith.constant 0 : index
    %4 = vector.load %arg3[%c0_3, %c0_4, %c0_5] : memref<1x512x128xf32, #tpu.memory_space<vmem>>, vector<1x512x128xf32>
    %5 = arith.subf %4, %3 : vector<1x512x128xf32>
    %6 = vector.broadcast %2 : vector<1x1x128xf32> to vector<1x512x128xf32>
    %7 = arith.mulf %5, %6 : vector<1x512x128xf32>
    %8 = arith.addf %7, %3 : vector<1x512x128xf32>
    %c0_6 = arith.constant 0 : index
    %c0_7 = arith.constant 0 : index
    %c0_8 = arith.constant 0 : index
    %9 = vector.load %arg5[%c0_6, %c0_7, %c0_8] : memref<1x512x128xf32, #tpu.memory_space<vmem>>, vector<1x512x128xf32>
    tpu.vector_store %arg5[%c0_6, %c0_7, %c0_8], %8 {strides = array<i32>} : memref<1x512x128xf32, #tpu.memory_space<vmem>>, vector<1x512x128xf32>,
    return
  }
  func.func @transform_0(%arg0: i32, %arg1: i32) -> (i32, i32, i32) {
    %c0_i32 = arith.constant 0 : i32
    %c0_i32_0 = arith.constant 0 : i32
    return %arg0, %arg1, %c0_i32 : i32, i32, i32
  }
  func.func @transform_1(%arg0: i32, %arg1: i32) -> (i32, i32, i32) {
    %c0_i32 = arith.constant 0 : i32
    %c0_i32_0 = arith.constant 0 : i32
    return %arg0, %arg1, %c0_i32 : i32, i32, i32
  }
  func.func @transform_2(%arg0: i32, %arg1: i32) -> (i32, i32) {
    %c0_i32 = arith.constant 0 : i32
    %c0_i32_0 = arith.constant 0 : i32
    %c0_i32_1 = arith.constant 0 : i32
    return %c0_i32, %c0_i32_0 : i32, i32
  }
  func.func @transform_3(%arg0: i32, %arg1: i32) -> (i32, i32, i32) {
    %c0_i32 = arith.constant 0 : i32
    %c0_i32_0 = arith.constant 0 : i32
    return %arg0, %arg1, %c0_i32 : i32, i32, i32
  }
}

module attributes {stable_mosaic.version = 11 : i64} {
  func.func @_gap_gate_kernel(%arg0: i32, %arg1: memref<2x512x128xf32, #tpu.memory_space<vmem>>, %arg2: memref<2x512x128xf32, #tpu.memory_space<vmem>>, %arg3: memref<128x128xf32, #tpu.memory_space<vmem>>, %arg4: memref<1x128xf32, #tpu.memory_space<vmem>>, %arg5: memref<1x128xf32, #tpu.memory_space<vmem>>, %arg6: memref<128x128xf32, #tpu.memory_space<vmem>>, %arg7: memref<1x128xf32, #tpu.memory_space<vmem>>, %arg8: memref<1x128xf32, #tpu.memory_space<vmem>>, %arg9: memref<2x128xf32, #tpu.memory_space<vmem>>, %arg10: memref<2x128xf32, #tpu.memory_space<vmem>>) attributes {dimension_semantics = [#tpu.dimension_semantics<arbitrary>], iteration_bounds = array<i64: 2>, scalar_prefetch = 0 : i64, scratch_operands = 1 : i64, tpu.core_type = #tpu.core_type<tc>, window_params = [{transform_indices = @transform_0, window_bounds = array<i64: 2, 512, 128>}, {transform_indices = @transform_1, window_bounds = array<i64: 2, 512, 128>}, {pipeline_mode = #tpu.pipeline_mode<synchronous>, transform_indices = @transform_2, window_bounds = array<i64: 128, 128>}, {pipeline_mode = #tpu.pipeline_mode<synchronous>, transform_indices = @transform_3, window_bounds = array<i64: 1, 128>}, {pipeline_mode = #tpu.pipeline_mode<synchronous>, transform_indices = @transform_4, window_bounds = array<i64: 1, 128>}, {pipeline_mode = #tpu.pipeline_mode<synchronous>, transform_indices = @transform_5, window_bounds = array<i64: 128, 128>}, {pipeline_mode = #tpu.pipeline_mode<synchronous>, transform_indices = @transform_6, window_bounds = array<i64: 1, 128>}, {pipeline_mode = #tpu.pipeline_mode<synchronous>, transform_indices = @transform_7, window_bounds = array<i64: 1, 128>}, {pipeline_mode = #tpu.pipeline_mode<synchronous>, transform_indices = @transform_8, window_bounds = array<i64: 2, 128>}]} {
    %c0_i32 = arith.constant 0 : i32
    %0 = arith.cmpi eq, %arg0, %c0_i32 : i32
    %1 = arith.extui %0 : i1 to i32
    %c0_i32_0 = arith.constant 0 : i32
    %2 = arith.cmpi ne, %1, %c0_i32_0 : i32
    scf.if %2 {
      %cst_11 = arith.constant 0.000000e+00 : f32
      %13 = vector.broadcast %cst_11 : f32 to vector<2x128xf32>
      %c0_12 = arith.constant 0 : index
      %c0_13 = arith.constant 0 : index
      %14 = vector.load %arg10[%c0_12, %c0_13] : memref<2x128xf32, #tpu.memory_space<vmem>>, vector<2x128xf32>
      tpu.vector_store %arg10[%c0_12, %c0_13], %13 {strides = array<i32>} : memref<2x128xf32, #tpu.memory_space<vmem>>, vector<2x128xf32>,
    } else {
    }
    %c0 = arith.constant 0 : index
    %c0_1 = arith.constant 0 : index
    %3 = vector.load %arg10[%c0, %c0_1] : memref<2x128xf32, #tpu.memory_space<vmem>>, vector<2x128xf32>
    %c0_2 = arith.constant 0 : index
    %c0_3 = arith.constant 0 : index
    %c0_4 = arith.constant 0 : index
    %4 = vector.load %arg1[%c0_2, %c0_3, %c0_4] : memref<2x512x128xf32, #tpu.memory_space<vmem>>, vector<2x512x128xf32>
    %c0_5 = arith.constant 0 : index
    %c0_6 = arith.constant 0 : index
    %c0_7 = arith.constant 0 : index
    %5 = vector.load %arg2[%c0_5, %c0_6, %c0_7] : memref<2x512x128xf32, #tpu.memory_space<vmem>>, vector<2x512x128xf32>
    %6 = arith.addf %4, %5 : vector<2x512x128xf32>
    %cst = arith.constant dense<0.000000e+00> : vector<2x128xf32>
    %7 = vector.multi_reduction <add>, %6, %cst [1] : vector<2x512x128xf32> to vector<2x128xf32>
    %8 = arith.addf %3, %7 : vector<2x128xf32>
    %c0_8 = arith.constant 0 : index
    %c0_9 = arith.constant 0 : index
    %9 = vector.load %arg10[%c0_8, %c0_9] : memref<2x128xf32, #tpu.memory_space<vmem>>, vector<2x128xf32>
    tpu.vector_store %arg10[%c0_8, %c0_9], %8 {strides = array<i32>} : memref<2x128xf32, #tpu.memory_space<vmem>>, vector<2x128xf32>,
    %c1_i32 = arith.constant 1 : i32
    %10 = arith.cmpi eq, %arg0, %c1_i32 : i32
    %11 = arith.extui %10 : i1 to i32
    %c0_i32_10 = arith.constant 0 : i32
    %12 = arith.cmpi ne, %11, %c0_i32_10 : i32
    scf.if %12 {
      %c0_11 = arith.constant 0 : index
      %c0_12 = arith.constant 0 : index
      %13 = vector.load %arg10[%c0_11, %c0_12] : memref<2x128xf32, #tpu.memory_space<vmem>>, vector<2x128xf32>
      %cst_13 = arith.constant 9.765625E-4 : f32
      %14 = vector.broadcast %cst_13 : f32 to vector<2x128xf32>
      %15 = arith.mulf %13, %14 : vector<2x128xf32>
      %c0_14 = arith.constant 0 : index
      %c0_15 = arith.constant 0 : index
      %16 = vector.load %arg3[%c0_14, %c0_15] : memref<128x128xf32, #tpu.memory_space<vmem>>, vector<128x128xf32>
      %cst_16 = arith.constant dense<0.000000e+00> : vector<2x128xf32>
      %17 = tpu.matmul %15, %16, %cst_16 {dimension_numbers = #tpu.dot_dimension_numbers<[1], [0], [0], [1], [0, 0, 1, 1], [], []>} : vector<2x128xf32>, vector<128x128xf32>, vector<2x128xf32> -> vector<2x128xf32>
      %c0_17 = arith.constant 0 : index
      %c0_18 = arith.constant 0 : index
      %18 = vector.load %arg4[%c0_17, %c0_18] : memref<1x128xf32, #tpu.memory_space<vmem>>, vector<1x128xf32>
      %19 = vector.broadcast %18 : vector<1x128xf32> to vector<2x128xf32>
      %20 = arith.mulf %17, %19 : vector<2x128xf32>
      %c0_19 = arith.constant 0 : index
      %c0_20 = arith.constant 0 : index
      %21 = vector.load %arg5[%c0_19, %c0_20] : memref<1x128xf32, #tpu.memory_space<vmem>>, vector<1x128xf32>
      %22 = vector.broadcast %21 : vector<1x128xf32> to vector<2x128xf32>
      %23 = arith.addf %20, %22 : vector<2x128xf32>
      %cst_21 = arith.constant 0.000000e+00 : f32
      %24 = vector.broadcast %cst_21 : f32 to vector<2x128xf32>
      %25 = arith.maximumf %23, %24 : vector<2x128xf32>
      %c0_22 = arith.constant 0 : index
      %c0_23 = arith.constant 0 : index
      %26 = vector.load %arg6[%c0_22, %c0_23] : memref<128x128xf32, #tpu.memory_space<vmem>>, vector<128x128xf32>
      %cst_24 = arith.constant dense<0.000000e+00> : vector<2x128xf32>
      %27 = tpu.matmul %25, %26, %cst_24 {dimension_numbers = #tpu.dot_dimension_numbers<[1], [0], [0], [1], [0, 0, 1, 1], [], []>} : vector<2x128xf32>, vector<128x128xf32>, vector<2x128xf32> -> vector<2x128xf32>
      %c0_25 = arith.constant 0 : index
      %c0_26 = arith.constant 0 : index
      %28 = vector.load %arg7[%c0_25, %c0_26] : memref<1x128xf32, #tpu.memory_space<vmem>>, vector<1x128xf32>
      %29 = vector.broadcast %28 : vector<1x128xf32> to vector<2x128xf32>
      %30 = arith.mulf %27, %29 : vector<2x128xf32>
      %c0_27 = arith.constant 0 : index
      %c0_28 = arith.constant 0 : index
      %31 = vector.load %arg8[%c0_27, %c0_28] : memref<1x128xf32, #tpu.memory_space<vmem>>, vector<1x128xf32>
      %32 = vector.broadcast %31 : vector<1x128xf32> to vector<2x128xf32>
      %33 = arith.addf %30, %32 : vector<2x128xf32>
      %34 = arith.negf %33 : vector<2x128xf32>
      %35 = math.exp %34 : vector<2x128xf32>
      %cst_29 = arith.constant 1.000000e+00 : f32
      %36 = vector.broadcast %cst_29 : f32 to vector<2x128xf32>
      %37 = arith.addf %36, %35 : vector<2x128xf32>
      %38 = arith.divf %36, %37 : vector<2x128xf32>
      %c0_30 = arith.constant 0 : index
      %c0_31 = arith.constant 0 : index
      %39 = vector.load %arg9[%c0_30, %c0_31] : memref<2x128xf32, #tpu.memory_space<vmem>>, vector<2x128xf32>
      tpu.vector_store %arg9[%c0_30, %c0_31], %38 {strides = array<i32>} : memref<2x128xf32, #tpu.memory_space<vmem>>, vector<2x128xf32>,
    } else {
    }
    return
  }
  func.func @transform_0(%arg0: i32) -> (i32, i32, i32) {
    %c0_i32 = arith.constant 0 : i32
    %c0_i32_0 = arith.constant 0 : i32
    %c0_i32_1 = arith.constant 0 : i32
    return %c0_i32, %arg0, %c0_i32_0 : i32, i32, i32
  }
  func.func @transform_1(%arg0: i32) -> (i32, i32, i32) {
    %c0_i32 = arith.constant 0 : i32
    %c0_i32_0 = arith.constant 0 : i32
    %c0_i32_1 = arith.constant 0 : i32
    return %c0_i32, %arg0, %c0_i32_0 : i32, i32, i32
  }
  func.func @transform_2(%arg0: i32) -> (i32, i32) {
    %c0_i32 = arith.constant 0 : i32
    %c0_i32_0 = arith.constant 0 : i32
    %c0_i32_1 = arith.constant 0 : i32
    return %c0_i32, %c0_i32_0 : i32, i32
  }
  func.func @transform_3(%arg0: i32) -> (i32, i32) {
    %c0_i32 = arith.constant 0 : i32
    %c0_i32_0 = arith.constant 0 : i32
    %c0_i32_1 = arith.constant 0 : i32
    return %c0_i32, %c0_i32_0 : i32, i32
  }
  func.func @transform_4(%arg0: i32) -> (i32, i32) {
    %c0_i32 = arith.constant 0 : i32
    %c0_i32_0 = arith.constant 0 : i32
    %c0_i32_1 = arith.constant 0 : i32
    return %c0_i32, %c0_i32_0 : i32, i32
  }
  func.func @transform_5(%arg0: i32) -> (i32, i32) {
    %c0_i32 = arith.constant 0 : i32
    %c0_i32_0 = arith.constant 0 : i32
    %c0_i32_1 = arith.constant 0 : i32
    return %c0_i32, %c0_i32_0 : i32, i32
  }
  func.func @transform_6(%arg0: i32) -> (i32, i32) {
    %c0_i32 = arith.constant 0 : i32
    %c0_i32_0 = arith.constant 0 : i32
    %c0_i32_1 = arith.constant 0 : i32
    return %c0_i32, %c0_i32_0 : i32, i32
  }
  func.func @transform_7(%arg0: i32) -> (i32, i32) {
    %c0_i32 = arith.constant 0 : i32
    %c0_i32_0 = arith.constant 0 : i32
    %c0_i32_1 = arith.constant 0 : i32
    return %c0_i32, %c0_i32_0 : i32, i32
  }
  func.func @transform_8(%arg0: i32) -> (i32, i32) {
    %c0_i32 = arith.constant 0 : i32
    %c0_i32_0 = arith.constant 0 : i32
    %c0_i32_1 = arith.constant 0 : i32
    return %c0_i32, %c0_i32_0 : i32, i32
  }
}

</mosaic_0001>

<bundles_post_ra>
// kernel: sk_layer_forward.3
= control target key start
LH: loop header
LB: loop body
LE: loop exit
PB: predicated region body
PF: predicated region fallthrough
CT: control target
= control target key end

     0   :  { %s1639_s0 = inlined_call_operand.hbm [shape: f32[2,1024,128], index: 0, kind: input, shape index: {}]   ;;  %s1640_s1 = inlined_call_operand.hbm [shape: f32[2,1024,128], index: 1, kind: input, shape index: {}]   ;;  %s1641_s2 = inlined_call_operand.vmem [shape: f32[2,128], index: 2, kind: input, shape index: {}]   ;;  %s1642_s3 = inlined_call_operand.hbm [shape: f32[2,1024,128], index: 3, kind: output, shape index: {}]  }
   0x1   :  { %1646 = sst [smem:[#allocation14_spill]] %s1639_s0 }
   0x2   :  { %8 = vsyncpa [#allocation3], 0 }
   0x3   :  { %10 = vsyncpa [#allocation3 + $0x1], 0 }
   0x4   :  { %11 = vsyncpa [#allocation6], 0 }
   0x5   :  { %13 = vsyncpa [#allocation6 + $0x1], 0 }
   0x6   :  { %14 = vsyncpa [#allocation4], 0 }
   0x7   :  { %16 = vsyncpa [#allocation4 + $0x1], 0  ;;  %s1078_s12 = smov 0   ;;  %s1080_s13 = smov 0  }
   0x8   :  { %s1082_s14 = smov 0   ;;  %s1084_s15 = smov 0  }
   0x9   :  { %s1086_s16 = smov 0   ;;  %s1088_s17 = smov 0  }
   0xa   :  { %s1090_s18 = smov 0   ;;  %s1092_s19 = smov 0  }
   0xb LB: > { %1647 = sst [smem:[#allocation11_spill]] %s1048_s18  ;;  %s780_s20 = sadd.s32 4294967295, %s1052_s19   ;;  %s1052_s19 = sphi %s1092_s19, %s22_s19   ;;  %s1048_s18 = sphi %s1090_s18, %s1658_s18   ;;  %s1044_s17 = sphi %s1088_s17, %s1663_s17   ;;  %s1040_s16 = sphi %s1086_s16, %s1656_s16   ;;  %s1036_s15 = sphi %s1084_s15, %s1662_s15   ;;  %s1032_s14 = sphi %s1082_s14, %s1661_s14   ;;  %s1028_s13 = sphi %s1080_s13, %s1660_s13   ;;  %s1024_s12 = sphi %s1078_s12, %s1659_s12  }
   0xc   : > { %s781_s21 = sadd.s32 4294967294, %s1052_s19   ;;  %s31_s22 = sadd.s32 1, %s1044_s17 }
   0xd   : > { %s34_s23 = sadd.s32 1, %s1048_s18  ;;  %p32_p0 = scmp.ge.s32.totalorder %s31_s22, 2 }
   0xe   : > { %s43_s24 = sadd.s32 1, %s1032_s14  ;;  %p50_p1 = scmp.ne.s32.totalorder %s1032_s14, %s1028_s13 }
   0xf   : > { %p51_p2 = scmp.eq.s32.totalorder %s1052_s19, 0  ;;  %s1665_s22 = smov (%p32_p0, %s31_s22), 0 }
  0x10   : > { %1648 = sst [smem:[#allocation12_spill]] %s1665_s22  ;;  %s1667_s23 = smov (!%p32_p0, %s34_s23), %s1048_s18 }
  0x11   : > { %s39_s25 = ssub.s32 %s1044_s17, %s1665_s22  ;;  %p1131_p3 = por %p51_p2, %p50_p1 }
  0x12   : > { %p36_p4 = scmp.ge.s32.totalorder %s1667_s23, 2  ;;  %p56_p5 = scmp.ne.s32.totalorder %s1028_s13, %s1024_s12 }
  0x13   : > { %p57_p6 = scmp.eq.s32.totalorder %s780_s20, 0  ;;  %p131_p7 = scmp.eq.s32.totalorder %s780_s20, 3 }
  0x14   : > { %s1669_s23 = smov (%p36_p4, %s1667_s23), 0  ;;  %p137_p10 = scmp.eq.s32.totalorder %s781_s21, 3 }
  0x15   : > { %1650 = sst [smem:[#allocation13_spill]] %s1669_s23  ;;  %p1139_p8 = por %p57_p6, %p56_p5 }
  0x16   : > { %p1143_p9 = por %p131_p7, %p50_p1  ;;  %s38_s29 = ssub.s32 %s1048_s18, %s1669_s23 }
  0x17   : > { %s40_s30 = sor.u32 %s39_s25, %s38_s29  ;;  %p1149_p12 = por %p137_p10, %p56_p5 }
  0x18   : > { %p41_p11 = scmp.eq.s32.totalorder %s40_s30, 0  ;;  %p819_p13 = scmp.lt.s32.totalorder %s1052_s19, 4 }
  0x19   : > { %s1155_s5 = sand.u32 1, %s1032_s14   ;;  %s785_s8 = sshll.u32 %s1044_s17, 6 }
  0x1a   : > { %s1158_s6 = scalar_select %p41_p11, %s1032_s14, %s43_s24  }
  0x1b   : > { %s784_s7 = sshll.u32 %s1155_s5, 9  ;;  %s786_s9 = sshll.u32 %s1048_s18, 7 }
  0x1c   : > { %s164_s10 = scalar_lea.vmem [#allocation2], %s784_s7  ;;  %s169_s20 = sadd.s32 %s786_s9, %s785_s8 }
  0x1d   : > { %s174_s11 = sshll.u32 %s164_s10, 4  ;;  %s787_s21 = sshll.u32 %s169_s20, 3  ;;  %s175_s11 = int_to_ptr.vmem [resolvable:$true] %s174_s11 }
  0x1e   : > { %p1165_p0 = pnand %p819_p13, %p1131_p3  ;;  %s1655_s0 = sld [smem:[#allocation14_spill]] }
  0x1f   : > { %s161_s22 = scalar_lea.sflag [#allocation3], %s1155_s5  ;;  %s1054_s18 = smov 128  }
  0x20   : > { %s1055_s10 = smov 8   ;;  %p792_p1 = scmp.ge.s32.totalorder %s1052_s19, 1 }
  0x21   : > { %p206_p2 = scmp.lt.s32.totalorder %s1052_s19, 5  ;;  %s195_s9 = scalar_lea.hbm %s1640_s1, %s787_s21 }
  0x22   : > { %s196_s20 = sshll.u32 %s195_s9, 4  ;;  %s188_s29 = scalar_lea.vmem [#allocation5], %s784_s7  ;;  %s197_s20 = int_to_ptr.hbm [resolvable:$true] %s196_s20 }
  0x23   : > { %p207_p3 = pnand %p792_p1, %p206_p2  ;;  %s198_s30 = sshll.u32 %s188_s29, 4  ;;  %s199_s30 = int_to_ptr.vmem [resolvable:$true] %s198_s30 }
  0x24   : > { %s171_s24 = scalar_lea.hbm %s1655_s0, %s787_s21  ;;  %s1184_s0 = sand.u32 (!%p207_p3), 1, %s1028_s13  }
  0x25   : > { %s172_s23 = sshll.u32 %s171_s24, 4  ;;  %s185_s24 = scalar_lea.sflag [#allocation6], %s1155_s5  ;;  %s173_s23 = int_to_ptr.hbm [resolvable:$true] %s172_s23 }
  0x26   : > { %811 = dma.hbm_to_vmem [thread:$0]  (!%p1165_p0), %s173_s23, 8192, %s175_s11, %s161_s22, %s1054_s18, %s1054_s18, %s1055_s10  }
  0x27   : > { %814 = dma.hbm_to_vmem [thread:$0]  (!%p1165_p0), %s197_s20, 8192, %s199_s30, %s185_s24, %s1054_s18, %s1054_s18, %s1055_s10  }
  0x28   : > { %210 = sbr.rel (%p207_p3) target bundleno = 123 (0x7b), region = 32  ;;  %s1187_s22 = sshll.u32 (!%p207_p3), %s1184_s0, 9 }
  0x29   : > { %s213_s23 = scalar_lea.sflag (!%p207_p3), [#allocation3], %s1184_s0  ;;  %s1191_s11 = scalar_lea.vmem (!%p207_p3), [#allocation2], %s1187_s22 }
  0x2d   : > { %1011 = dma.done.wait (%p1139_p8), %s213_s23, 8192  }
  0x2e   : > { %1013 = vsyncadd (%p1139_p8), %s213_s23, 4294959104  ;;  %s223_s18 = scalar_lea.sflag [#allocation6], %s1184_s0  ;;  %s1199_s5 = scalar_lea.vmem [#allocation5], %s1187_s22 }
  0x2f   : > { %1015 = dma.done.wait (%p1139_p8), %s223_s18, 8192  }
  0x30   : > { %1017 = vsyncadd (%p1139_p8), %s223_s18, 4294959104  ;;  %s258_s25 = scalar_lea.vmem %s1641_s2, %s1040_s16  ;;  %v260_v0 = vld [vmem:[%s1191_s11] sm:$0xff]  ;;  %v261_v4 = vld [vmem:[%s1191_s11 + $0x8] sm:$0xff]  ;;  %s1236_s27 = scalar_lea.vmem [#allocation7], %s1187_s22 }
  0x31   : > { %v324_v1 = vld [vmem:[%s1199_s5] sm:$0xff]  ;;  %v325_v5 = vld [vmem:[%s1199_s5 + $0x8] sm:$0xff]  ;;  %v262_v7 = vld [vmem:[%s1191_s11 + $0x10] sm:$0xff]  ;;  %s797_s10 = sshll.u32 %s1036_s15, 6  ;;  %s798_s26 = sshll.u32 %s1040_s16, 7 }
  0x32   : > { %v388_v2 = vsub.f32 %v324_v1, %v260_v0  ;;  %v1211_v3 = vld [vmem:[%s258_s25] ss:$0 sm:$0xff]  ;;  %v389_v6 = vsub.f32 %v325_v5, %v261_v4  ;;  %v326_v8 = vld [vmem:[%s1199_s5 + $0x10] sm:$0xff]  ;;  %v263_v9 = vld [vmem:[%s1191_s11 + $0x18] sm:$0xff]  ;;  %s657_s15 = sadd.s32 %s798_s26, %s797_s10  ;;  %s660_s29 = sshll.u32 %s1236_s27, 4  ;;  %s661_s29 = int_to_ptr.vmem [resolvable:$true] %s660_s29 }
  0x33   : > { %v390_v11 = vsub.f32 %v326_v8, %v262_v7  ;;  %v327_v12 = vld [vmem:[%s1199_s5 + $0x18] sm:$0xff]  ;;  %v264_v13 = vld [vmem:[%s1191_s11 + $0x20] sm:$0xff]  ;;  %v265_v18 = vld [vmem:[%s1191_s11 + $0x28] sm:$0xff]  ;;  %s799_s16 = sshll.u32 %s657_s15, 3  ;;  %s646_s24 = scalar_lea.sflag [#allocation4], %s1184_s0 }
  0x34   : > { %v453_v10 = vmul.f32 %v1211_v3, %v388_v2  ;;  %v328_v14 = vld [vmem:[%s1199_s5 + $0x20] sm:$0xff]  ;;  %v454_v15 = vmul.f32 %v1211_v3, %v389_v6  ;;  %v391_v16 = vsub.f32 %v327_v12, %v263_v9  ;;  %v329_v19 = vld [vmem:[%s1199_s5 + $0x28] sm:$0xff]  ;;  %v266_v20 = vld [vmem:[%s1191_s11 + $0x30] sm:$0xff]  ;;  %s659_s20 = scalar_lea.hbm %s1642_s3, %s799_s16 }
  0x35   : > { %v392_v17 = vsub.f32 %v328_v14, %v264_v13  ;;  %v455_v22 = vmul.f32 %v1211_v3, %v390_v11  ;;  %v393_v23 = vsub.f32 %v329_v19, %v265_v18  ;;  %v330_v24 = vld [vmem:[%s1199_s5 + $0x30] sm:$0xff]  ;;  %v267_v25 = vld [vmem:[%s1191_s11 + $0x38] sm:$0xff]  ;;  %v268_v31 = vld [vmem:[%s1191_s11 + $0x40] sm:$0xff]  ;;  %s662_s30 = sshll.u32 %s659_s20, 4  ;;  %s663_s30 = int_to_ptr.hbm [resolvable:$true] %s662_s30 }
  0x36   : > { %v517_v21 = vadd.f32 %v453_v10, %v260_v0  ;;  %v331_v26 = vld [vmem:[%s1199_s5 + $0x38] sm:$0xff]  ;;  %v518_v27 = vadd.f32 %v454_v15, %v261_v4  ;;  %v456_v28 = vmul.f32 %v1211_v3, %v391_v16  ;;  %v394_v30 = vsub.f32 %v330_v24, %v266_v20  ;;  %v332_v32 = vld [vmem:[%s1199_s5 + $0x40] sm:$0xff]  ;;  %v269_v33 = vld [vmem:[%s1191_s11 + $0x48] sm:$0xff]  ;;  %s964_s22 = sshra.s32 %s663_s30, 4  ;;  %s965_s22 = int_to_ptr.hbm [resolvable:$true] %s964_s22 }
  0x37   : > { %v457_v29 = vmul.f32 %v1211_v3, %v392_v17  ;;  %v519_v34 = vadd.f32 %v455_v22, %v262_v7  ;;  %v458_v35 = vmul.f32 %v1211_v3, %v393_v23  ;;  %v395_v36 = vsub.f32 %v331_v26, %v267_v25  ;;  %v333_v38 = vld [vmem:[%s1199_s5 + $0x48] sm:$0xff]  ;;  %v270_v39 = vld [vmem:[%s1191_s11 + $0x50] sm:$0xff]  ;;  %v271_v45 = vld [vmem:[%s1191_s11 + $0x58] sm:$0xff]  ;;  %s966_s23 = scalar_lea.hbm %s965_s22, 512  ;;  %p971_p7 = scmp.lt.s32.totalorder %s965_s22, %s1642_s3 }
  0x38   : > { %581 = vst [vmem:[%s1236_s27] sm:$0xff] %v517_v21  ;;  %v396_v37 = vsub.f32 %v332_v32, %v268_v31  ;;  %v334_v40 = vld [vmem:[%s1199_s5 + $0x50] sm:$0xff]  ;;  %v520_v41 = vadd.f32 %v456_v28, %v263_v9  ;;  %v459_v43 = vmul.f32 %v1211_v3, %v394_v30  ;;  %v397_v44 = vsub.f32 %v333_v38, %v269_v33  ;;  %v335_v46 = vld [vmem:[%s1199_s5 + $0x58] sm:$0xff]  ;;  %v272_v47 = vld [vmem:[%s1191_s11 + $0x60] sm:$0xff]  ;;  %p967_p4 = scmp.ne.s32.totalorder %s965_s22, %s966_s23 }
  0x39   : > { %582 = vst [vmem:[%s1236_s27 + $0x8] sm:$0xff] %v518_v27  ;;  %v521_v42 = vadd.f32 %v457_v29, %v264_v13  ;;  %v522_v48 = vadd.f32 %v458_v35, %v265_v18  ;;  %v460_v49 = vmul.f32 %v1211_v3, %v395_v36  ;;  %v398_v51 = vsub.f32 %v334_v40, %v270_v39  ;;  %v336_v52 = vld [vmem:[%s1199_s5 + $0x60] sm:$0xff]  ;;  %v273_v53 = vld [vmem:[%s1191_s11 + $0x68] sm:$0xff]  ;;  %v274_v59 = vld [vmem:[%s1191_s11 + $0x70] sm:$0xff] }
  0x3a   : > { %583 = vst [vmem:[%s1236_s27 + $0x10] sm:$0xff] %v519_v34  ;;  %v461_v50 = vmul.f32 %v1211_v3, %v396_v37  ;;  %v337_v54 = vld [vmem:[%s1199_s5 + $0x68] sm:$0xff]  ;;  %v523_v55 = vadd.f32 %v459_v43, %v266_v20  ;;  %v462_v56 = vmul.f32 %v1211_v3, %v397_v44  ;;  %v399_v57 = vsub.f32 %v335_v46, %v271_v45  ;;  %v338_v60 = vld [vmem:[%s1199_s5 + $0x70] sm:$0xff]  ;;  %v275_v61 = vld [vmem:[%s1191_s11 + $0x78] sm:$0xff]  ;;  %p968_p5 = pnand %p967_p4, %p1143_p9 }
  0x3b   : > { %584 = vst [vmem:[%s1236_s27 + $0x18] sm:$0xff] %v520_v41  ;;  %v400_v58 = vsub.f32 %v336_v52, %v272_v47  ;;  %v524_v62 = vadd.f32 %v460_v49, %v267_v25  ;;  %v463_v0 = vmul.f32 %v1211_v3, %v398_v51  ;;  %v401_v1 = vsub.f32 %v337_v54, %v273_v53  ;;  %v339_v2 = vld [vmem:[%s1199_s5 + $0x78] sm:$0xff]  ;;  %v276_v4 = vld [vmem:[%s1191_s11 + $0x80] sm:$0xff]  ;;  %v277_v10 = vld [vmem:[%s1191_s11 + $0x88] sm:$0xff] }
  0x3c   : > { %585 = vst [vmem:[%s1236_s27 + $0x20] sm:$0xff] %v521_v42  ;;  %v525_v63 = vadd.f32 %v461_v50, %v268_v31  ;;  %v340_v5 = vld [vmem:[%s1199_s5 + $0x80] sm:$0xff]  ;;  %v526_v6 = vadd.f32 %v462_v56, %v269_v33  ;;  %v464_v7 = vmul.f32 %v1211_v3, %v399_v57  ;;  %v402_v9 = vsub.f32 %v338_v60, %v274_v59  ;;  %v341_v11 = vld [vmem:[%s1199_s5 + $0x88] sm:$0xff]  ;;  %v278_v12 = vld [vmem:[%s1191_s11 + $0x90] sm:$0xff]  ;;  %p969_p6 = pneg %p968_p5 }
  0x3d   : > { %586 = vst [vmem:[%s1236_s27 + $0x28] sm:$0xff] %v522_v48  ;;  %v465_v8 = vmul.f32 %v1211_v3, %v400_v58  ;;  %v527_v13 = vadd.f32 %v463_v0, %v270_v39  ;;  %v466_v14 = vmul.f32 %v1211_v3, %v401_v1  ;;  %v403_v15 = vsub.f32 %v339_v2, %v275_v61  ;;  %v342_v17 = vld [vmem:[%s1199_s5 + $0x90] sm:$0xff]  ;;  %v279_v18 = vld [vmem:[%s1191_s11 + $0x98] sm:$0xff]  ;;  %v280_v23 = vld [vmem:[%s1191_s11 + $0xa0] sm:$0xff] }
  0x3e   : > { %587 = vst [vmem:[%s1236_s27 + $0x30] sm:$0xff] %v523_v55  ;;  %v404_v16 = vsub.f32 %v340_v5, %v276_v4  ;;  %v343_v19 = vld [vmem:[%s1199_s5 + $0x98] sm:$0xff]  ;;  %v528_v20 = vadd.f32 %v464_v7, %v271_v45  ;;  %v467_v21 = vmul.f32 %v1211_v3, %v402_v9  ;;  %v405_v22 = vsub.f32 %v341_v11, %v277_v10  ;;  %v344_v24 = vld [vmem:[%s1199_s5 + $0xa0] sm:$0xff]  ;;  %v281_v25 = vld [vmem:[%s1191_s11 + $0xa8] sm:$0xff] }
  0x3f   : > { %588 = vst [vmem:[%s1236_s27 + $0x38] sm:$0xff] %v524_v62  ;;  %v529_v26 = vadd.f32 %v465_v8, %v272_v47  ;;  %v468_v27 = vmul.f32 %v1211_v3, %v403_v15  ;;  %v406_v29 = vsub.f32 %v342_v17, %v278_v12  ;;  %v345_v30 = vld [vmem:[%s1199_s5 + $0xa8] sm:$0xff]  ;;  %v282_v31 = vld [vmem:[%s1191_s11 + $0xb0] sm:$0xff]  ;;  %v530_v33 = vadd.f32 %v466_v14, %v273_v53  ;;  %v283_v37 = vld [vmem:[%s1191_s11 + $0xb8] sm:$0xff] }
  0x40   : > { %589 = vst [vmem:[%s1236_s27 + $0x40] sm:$0xff] %v525_v63  ;;  %v469_v28 = vmul.f32 %v1211_v3, %v404_v16  ;;  %v346_v32 = vld [vmem:[%s1199_s5 + $0xb0] sm:$0xff]  ;;  %v470_v34 = vmul.f32 %v1211_v3, %v405_v22  ;;  %v407_v35 = vsub.f32 %v343_v19, %v279_v18  ;;  %v408_v36 = vsub.f32 %v344_v24, %v280_v23  ;;  %v347_v38 = vld [vmem:[%s1199_s5 + $0xb8] sm:$0xff]  ;;  %v1291_v39 = vld [vmem:[%s1191_s11 + $0xc0] sm:$0xff] }
  0x41   : > { %590 = vst [vmem:[%s1236_s27 + $0x48] sm:$0xff] %v526_v6  ;;  %v531_v40 = vadd.f32 %v467_v21, %v274_v59  ;;  %v471_v41 = vmul.f32 %v1211_v3, %v406_v29  ;;  %v409_v42 = vsub.f32 %v345_v30, %v281_v25  ;;  %v348_v43 = vld [vmem:[%s1199_s5 + $0xc0] sm:$0xff]  ;;  %v1297_v44 = vld [vmem:[%s1191_s11 + $0xc8] sm:$0xff]  ;;  %v532_v46 = vadd.f32 %v468_v27, %v275_v61  ;;  %v1303_v49 = vld [vmem:[%s1191_s11 + $0xd0] sm:$0xff] }
  0x42   : > { %591 = vst [vmem:[%s1236_s27 + $0x50] sm:$0xff] %v527_v13  ;;  %v349_v45 = vld [vmem:[%s1199_s5 + $0xc8] sm:$0xff]  ;;  %v472_v47 = vmul.f32 %v1211_v3, %v407_v35  ;;  %v410_v48 = vsub.f32 %v346_v32, %v282_v31  ;;  %v350_v50 = vld [vmem:[%s1199_s5 + $0xd0] sm:$0xff]  ;;  %v533_v51 = vadd.f32 %v469_v28, %v276_v4  ;;  %v473_v52 = vmul.f32 %v1211_v3, %v408_v36  ;;  %v1310_v55 = vld [vmem:[%s1191_s11 + $0xd8] sm:$0xff] }
  0x43   : > { %592 = vst [vmem:[%s1236_s27 + $0x58] sm:$0xff] %v528_v20  ;;  %v411_v53 = vsub.f32 %v347_v38, %v283_v37  ;;  %v412_v54 = vsub.f32 %v348_v43, %v1291_v39  ;;  %v351_v56 = vld [vmem:[%s1199_s5 + $0xd8] sm:$0xff]  ;;  %v534_v57 = vadd.f32 %v470_v34, %v277_v10  ;;  %v474_v58 = vmul.f32 %v1211_v3, %v409_v42  ;;  %v1317_v60 = vld [vmem:[%s1191_s11 + $0xe0] sm:$0xff]  ;;  %v1324_v1 = vld [vmem:[%s1191_s11 + $0xe8] sm:$0xff] }
  0x44   : > { %593 = vst [vmem:[%s1236_s27 + $0x60] sm:$0xff] %v529_v26  ;;  %v413_v59 = vsub.f32 %v349_v45, %v1297_v44  ;;  %v352_v61 = vld [vmem:[%s1199_s5 + $0xe0] sm:$0xff]  ;;  %v535_v62 = vadd.f32 %v471_v41, %v278_v12  ;;  %v475_v63 = vmul.f32 %v1211_v3, %v410_v48  ;;  %v414_v0 = vsub.f32 %v350_v50, %v1303_v49  ;;  %v353_v2 = vld [vmem:[%s1199_s5 + $0xe8] sm:$0xff]  ;;  %v1331_v7 = vld [vmem:[%s1191_s11 + $0xf0] sm:$0xff] }
  0x45   : > { %594 = vst [vmem:[%s1236_s27 + $0x68] sm:$0xff] %v530_v33  ;;  %v536_v4 = vadd.f32 %v472_v47, %v279_v18  ;;  %v476_v5 = vmul.f32 %v1211_v3, %v411_v53  ;;  %v415_v6 = vsub.f32 %v351_v56, %v1310_v55  ;;  %v354_v8 = vld [vmem:[%s1199_s5 + $0xf0] sm:$0xff]  ;;  %v537_v9 = vadd.f32 %v473_v52, %v280_v23  ;;  %v1338_v12 = vld [vmem:[%s1191_s11 + $0xf8] sm:$0xff]  ;;  %v1345_v17 = vld [vmem:[%s1191_s11 + $0x100] sm:$0xff] }
  0x46   : > { %595 = vst [vmem:[%s1236_s27 + $0x70] sm:$0xff] %v531_v40  ;;  %v477_v10 = vmul.f32 %v1211_v3, %v412_v54  ;;  %v416_v11 = vsub.f32 %v352_v61, %v1317_v60  ;;  %v355_v13 = vld [vmem:[%s1199_s5 + $0xf8] sm:$0xff]  ;;  %v538_v14 = vadd.f32 %v474_v58, %v281_v25  ;;  %v478_v15 = vmul.f32 %v1211_v3, %v413_v59  ;;  %v356_v18 = vld [vmem:[%s1199_s5 + $0x100] sm:$0xff]  ;;  %v1352_v22 = vld [vmem:[%s1191_s11 + $0x108] sm:$0xff] }
  0x47   : > { %596 = vst [vmem:[%s1236_s27 + $0x78] sm:$0xff] %v532_v46  ;;  %v417_v16 = vsub.f32 %v353_v2, %v1324_v1  ;;  %v539_v19 = vadd.f32 %v475_v63, %v282_v31  ;;  %v479_v20 = vmul.f32 %v1211_v3, %v414_v0  ;;  %v418_v21 = vsub.f32 %v354_v8, %v1331_v7  ;;  %v357_v23 = vld [vmem:[%s1199_s5 + $0x108] sm:$0xff]  ;;  %v1359_v27 = vld [vmem:[%s1191_s11 + $0x110] sm:$0xff]  ;;  %v1367_v32 = vld [vmem:[%s1191_s11 + $0x118] sm:$0xff] }
  0x48   : > { %597 = vst [vmem:[%s1236_s27 + $0x80] sm:$0xff] %v533_v51  ;;  %v540_v24 = vadd.f32 %v476_v5, %v283_v37  ;;  %v480_v25 = vmul.f32 %v1211_v3, %v415_v6  ;;  %v419_v26 = vsub.f32 %v355_v13, %v1338_v12  ;;  %v358_v28 = vld [vmem:[%s1199_s5 + $0x110] sm:$0xff]  ;;  %v541_v29 = vadd.f32 %v477_v10, %v1291_v39  ;;  %v359_v33 = vld [vmem:[%s1199_s5 + $0x118] sm:$0xff]  ;;  %v1375_v37 = vld [vmem:[%s1191_s11 + $0x120] sm:$0xff] }
  0x49   : > { %598 = vst [vmem:[%s1236_s27 + $0x88] sm:$0xff] %v534_v57  ;;  %v481_v30 = vmul.f32 %v1211_v3, %v416_v11  ;;  %v420_v31 = vsub.f32 %v356_v18, %v1345_v17  ;;  %v542_v34 = vadd.f32 %v478_v15, %v1297_v44  ;;  %v482_v35 = vmul.f32 %v1211_v3, %v417_v16  ;;  %v360_v38 = vld [vmem:[%s1199_s5 + $0x120] sm:$0xff]  ;;  %v1383_v42 = vld [vmem:[%s1191_s11 + $0x128] sm:$0xff]  ;;  %v1391_v47 = vld [vmem:[%s1191_s11 + $0x130] sm:$0xff] }
  0x4a   : > { %599 = vst [vmem:[%s1236_s27 + $0x90] sm:$0xff] %v535_v62  ;;  %v421_v36 = vsub.f32 %v357_v23, %v1352_v22  ;;  %v543_v39 = vadd.f32 %v479_v20, %v1303_v49  ;;  %v483_v40 = vmul.f32 %v1211_v3, %v418_v21  ;;  %v422_v41 = vsub.f32 %v358_v28, %v1359_v27  ;;  %v361_v43 = vld [vmem:[%s1199_s5 + $0x128] sm:$0xff]  ;;  %v362_v48 = vld [vmem:[%s1199_s5 + $0x130] sm:$0xff]  ;;  %v1399_v52 = vld [vmem:[%s1191_s11 + $0x138] sm:$0xff] }
  0x4b   : > { %600 = vst [vmem:[%s1236_s27 + $0x98] sm:$0xff] %v536_v4  ;;  %v544_v44 = vadd.f32 %v480_v25, %v1310_v55  ;;  %v484_v45 = vmul.f32 %v1211_v3, %v419_v26  ;;  %v423_v46 = vsub.f32 %v359_v33, %v1367_v32  ;;  %v545_v49 = vadd.f32 %v481_v30, %v1317_v60  ;;  %v363_v53 = vld [vmem:[%s1199_s5 + $0x138] sm:$0xff]  ;;  %v1407_v57 = vld [vmem:[%s1191_s11 + $0x140] sm:$0xff]  ;;  %v1415_v62 = vld [vmem:[%s1191_s11 + $0x148] sm:$0xff] }
  0x4c   : > { %601 = vst [vmem:[%s1236_s27 + $0xa0] sm:$0xff] %v537_v9  ;;  %v485_v50 = vmul.f32 %v1211_v3, %v420_v31  ;;  %v424_v51 = vsub.f32 %v360_v38, %v1375_v37  ;;  %v546_v54 = vadd.f32 %v482_v35, %v1324_v1  ;;  %v486_v55 = vmul.f32 %v1211_v3, %v421_v36  ;;  %v364_v58 = vld [vmem:[%s1199_s5 + $0x140] sm:$0xff]  ;;  %v365_v63 = vld [vmem:[%s1199_s5 + $0x148] sm:$0xff]  ;;  %v1423_v4 = vld [vmem:[%s1191_s11 + $0x150] sm:$0xff] }
  0x4d   : > { %602 = vst [vmem:[%s1236_s27 + $0xa8] sm:$0xff] %v538_v14  ;;  %v425_v56 = vsub.f32 %v361_v43, %v1383_v42  ;;  %v547_v59 = vadd.f32 %v483_v40, %v1331_v7  ;;  %v487_v60 = vmul.f32 %v1211_v3, %v422_v41  ;;  %v426_v61 = vsub.f32 %v362_v48, %v1391_v47  ;;  %v366_v5 = vld [vmem:[%s1199_s5 + $0x150] sm:$0xff]  ;;  %v1431_v9 = vld [vmem:[%s1191_s11 + $0x158] sm:$0xff]  ;;  %v1439_v14 = vld [vmem:[%s1191_s11 + $0x160] sm:$0xff] }
  0x4e   : > { %603 = vst [vmem:[%s1236_s27 + $0xb0] sm:$0xff] %v539_v19  ;;  %v548_v0 = vadd.f32 %v484_v45, %v1338_v12  ;;  %v488_v1 = vmul.f32 %v1211_v3, %v423_v46  ;;  %v427_v2 = vsub.f32 %v363_v53, %v1399_v52  ;;  %v549_v6 = vadd.f32 %v485_v50, %v1345_v17  ;;  %v367_v10 = vld [vmem:[%s1199_s5 + $0x158] sm:$0xff]  ;;  %v368_v15 = vld [vmem:[%s1199_s5 + $0x160] sm:$0xff]  ;;  %v1447_v19 = vld [vmem:[%s1191_s11 + $0x168] sm:$0xff] }
  0x4f   : > { %604 = vst [vmem:[%s1236_s27 + $0xb8] sm:$0xff] %v540_v24  ;;  %v489_v7 = vmul.f32 %v1211_v3, %v424_v51  ;;  %v428_v8 = vsub.f32 %v364_v58, %v1407_v57  ;;  %v550_v11 = vadd.f32 %v486_v55, %v1352_v22  ;;  %v490_v12 = vmul.f32 %v1211_v3, %v425_v56  ;;  %v369_v20 = vld [vmem:[%s1199_s5 + $0x168] sm:$0xff]  ;;  %v1455_v24 = vld [vmem:[%s1191_s11 + $0x170] sm:$0xff]  ;;  %v371_v30 = vld [vmem:[%s1199_s5 + $0x178] sm:$0xff] }
  0x50   : > { %605 = vst [vmem:[%s1236_s27 + $0xc0] sm:$0xff] %v541_v29  ;;  %v429_v13 = vsub.f32 %v365_v63, %v1415_v62  ;;  %v551_v16 = vadd.f32 %v487_v60, %v1359_v27  ;;  %v491_v17 = vmul.f32 %v1211_v3, %v426_v61  ;;  %v430_v18 = vsub.f32 %v366_v5, %v1423_v4  ;;  %v370_v25 = vld [vmem:[%s1199_s5 + $0x170] sm:$0xff]  ;;  %v1463_v29 = vld [vmem:[%s1191_s11 + $0x178] sm:$0xff]  ;;  %v372_v35 = vld [vmem:[%s1199_s5 + $0x180] sm:$0xff] }
  0x51   : > { %606 = vst [vmem:[%s1236_s27 + $0xc8] sm:$0xff] %v542_v34  ;;  %v552_v21 = vadd.f32 %v488_v1, %v1367_v32  ;;  %v492_v22 = vmul.f32 %v1211_v3, %v427_v2  ;;  %v431_v23 = vsub.f32 %v367_v10, %v1431_v9  ;;  %v553_v26 = vadd.f32 %v489_v7, %v1375_v37  ;;  %v1471_v34 = vld [vmem:[%s1191_s11 + $0x180] sm:$0xff]  ;;  %v373_v40 = vld [vmem:[%s1199_s5 + $0x188] sm:$0xff]  ;;  %v374_v45 = vld [vmem:[%s1199_s5 + $0x190] sm:$0xff] }
  0x52   : > { %607 = vst [vmem:[%s1236_s27 + $0xd0] sm:$0xff] %v543_v39  ;;  %v493_v27 = vmul.f32 %v1211_v3, %v428_v8  ;;  %v432_v28 = vsub.f32 %v368_v15, %v1439_v14  ;;  %v554_v31 = vadd.f32 %v490_v12, %v1383_v42  ;;  %v494_v32 = vmul.f32 %v1211_v3, %v429_v13  ;;  %v1479_v39 = vld [vmem:[%s1191_s11 + $0x188] sm:$0xff]  ;;  %v375_v50 = vld [vmem:[%s1199_s5 + $0x198] sm:$0xff]  ;;  %v376_v55 = vld [vmem:[%s1199_s5 + $0x1a0] sm:$0xff] }
  0x53   : > { %608 = vst [vmem:[%s1236_s27 + $0xd8] sm:$0xff] %v544_v44  ;;  %v433_v33 = vsub.f32 %v369_v20, %v1447_v19  ;;  %v555_v36 = vadd.f32 %v491_v17, %v1391_v47  ;;  %v495_v37 = vmul.f32 %v1211_v3, %v430_v18  ;;  %v434_v38 = vsub.f32 %v370_v25, %v1455_v24  ;;  %v1487_v44 = vld [vmem:[%s1191_s11 + $0x190] sm:$0xff]  ;;  %v377_v60 = vld [vmem:[%s1199_s5 + $0x1a8] sm:$0xff]  ;;  %v379_v7 = vld [vmem:[%s1199_s5 + $0x1b8] sm:$0xff] }
  0x54   : > { %609 = vst [vmem:[%s1236_s27 + $0xe0] sm:$0xff] %v545_v49  ;;  %v556_v41 = vadd.f32 %v492_v22, %v1399_v52  ;;  %v496_v42 = vmul.f32 %v1211_v3, %v431_v23  ;;  %v435_v43 = vsub.f32 %v371_v30, %v1463_v29  ;;  %v557_v46 = vadd.f32 %v493_v27, %v1407_v57  ;;  %v1495_v49 = vld [vmem:[%s1191_s11 + $0x198] sm:$0xff]  ;;  %v378_v1 = vld [vmem:[%s1199_s5 + $0x1b0] sm:$0xff]  ;;  %v380_v12 = vld [vmem:[%s1199_s5 + $0x1c0] sm:$0xff] }
  0x55   : > { %610 = vst [vmem:[%s1236_s27 + $0xe8] sm:$0xff] %v546_v54  ;;  %v497_v47 = vmul.f32 %v1211_v3, %v432_v28  ;;  %v436_v48 = vsub.f32 %v372_v35, %v1471_v34  ;;  %v558_v51 = vadd.f32 %v494_v32, %v1415_v62  ;;  %v498_v52 = vmul.f32 %v1211_v3, %v433_v33  ;;  %v1503_v54 = vld [vmem:[%s1191_s11 + $0x1a0] sm:$0xff]  ;;  %v381_v17 = vld [vmem:[%s1199_s5 + $0x1c8] sm:$0xff]  ;;  %v382_v22 = vld [vmem:[%s1199_s5 + $0x1d0] sm:$0xff] }
  0x56   : > { %611 = vst [vmem:[%s1236_s27 + $0xf0] sm:$0xff] %v547_v59  ;;  %v437_v53 = vsub.f32 %v373_v40, %v1479_v39  ;;  %v559_v56 = vadd.f32 %v495_v37, %v1423_v4  ;;  %v499_v57 = vmul.f32 %v1211_v3, %v434_v38  ;;  %v438_v58 = vsub.f32 %v374_v45, %v1487_v44  ;;  %v1511_v59 = vld [vmem:[%s1191_s11 + $0x1a8] sm:$0xff]  ;;  %v383_v27 = vld [vmem:[%s1199_s5 + $0x1d8] sm:$0xff]  ;;  %v384_v32 = vld [vmem:[%s1199_s5 + $0x1e0] sm:$0xff] }
  0x57   : > { %612 = vst [vmem:[%s1236_s27 + $0xf8] sm:$0xff] %v548_v0  ;;  %v560_v61 = vadd.f32 %v496_v42, %v1431_v9  ;;  %v500_v62 = vmul.f32 %v1211_v3, %v435_v43  ;;  %v439_v63 = vsub.f32 %v375_v50, %v1495_v49  ;;  %v1519_v0 = vld [vmem:[%s1191_s11 + $0x1b0] sm:$0xff]  ;;  %v561_v2 = vadd.f32 %v497_v47, %v1439_v14  ;;  %v385_v37 = vld [vmem:[%s1199_s5 + $0x1e8] sm:$0xff]  ;;  %v387_v47 = vld [vmem:[%s1199_s5 + $0x1f8] sm:$0xff] }
  0x58   : > { %613 = vst [vmem:[%s1236_s27 + $0x100] sm:$0xff] %v549_v6  ;;  %v501_v4 = vmul.f32 %v1211_v3, %v436_v48  ;;  %v440_v5 = vsub.f32 %v376_v55, %v1503_v54  ;;  %v315_v6 = vld [vmem:[%s1191_s11 + $0x1b8] sm:$0xff]  ;;  %v562_v8 = vadd.f32 %v498_v52, %v1447_v19  ;;  %v502_v9 = vmul.f32 %v1211_v3, %v437_v53  ;;  %v386_v42 = vld [vmem:[%s1199_s5 + $0x1f0] sm:$0xff]  ;;  %s970_s5 = scalar_lea.hbm %s1642_s3, 2048 }
  0x59   : > { %614 = vst [vmem:[%s1236_s27 + $0x108] sm:$0xff] %v550_v11  ;;  %v441_v10 = vsub.f32 %v377_v60, %v1511_v59  ;;  %v316_v11 = vld [vmem:[%s1191_s11 + $0x1c0] sm:$0xff]  ;;  %v563_v13 = vadd.f32 %v499_v57, %v1455_v24  ;;  %v503_v14 = vmul.f32 %v1211_v3, %v438_v58  ;;  %v442_v15 = vsub.f32 %v378_v1, %v1519_v0  ;;  %p972_p8 = scmp.lt.s32.totalorder %s970_s5, %s966_s23 }
  0x5a   : > { %615 = vst [vmem:[%s1236_s27 + $0x110] sm:$0xff] %v551_v16  ;;  %v317_v16 = vld [vmem:[%s1191_s11 + $0x1c8] sm:$0xff]  ;;  %v564_v18 = vadd.f32 %v500_v62, %v1463_v29  ;;  %v504_v19 = vmul.f32 %v1211_v3, %v439_v63  ;;  %v443_v20 = vsub.f32 %v379_v7, %v315_v6  ;;  %v565_v23 = vadd.f32 %v501_v4, %v1471_v34 }
  0x5b   : > { %616 = vst [vmem:[%s1236_s27 + $0x118] sm:$0xff] %v552_v21  ;;  %v318_v21 = vld [vmem:[%s1191_s11 + $0x1d0] sm:$0xff]  ;;  %v505_v24 = vmul.f32 %v1211_v3, %v440_v5  ;;  %v444_v25 = vsub.f32 %v380_v12, %v316_v11  ;;  %v566_v28 = vadd.f32 %v502_v9, %v1479_v39  ;;  %v506_v29 = vmul.f32 %v1211_v3, %v441_v10  ;;  %p973_p10 = por %p972_p8, %p971_p7 }
  0x5c   : > { %617 = vst [vmem:[%s1236_s27 + $0x120] sm:$0xff] %v553_v26  ;;  %v319_v26 = vld [vmem:[%s1191_s11 + $0x1d8] sm:$0xff]  ;;  %v445_v30 = vsub.f32 %v381_v17, %v317_v16  ;;  %v567_v33 = vadd.f32 %v503_v14, %v1487_v44  ;;  %v507_v34 = vmul.f32 %v1211_v3, %v442_v15  ;;  %v446_v35 = vsub.f32 %v382_v22, %v318_v21 }
  0x5d   : > { %618 = vst [vmem:[%s1236_s27 + $0x128] sm:$0xff] %v554_v31  ;;  %v320_v31 = vld [vmem:[%s1191_s11 + $0x1e0] sm:$0xff]  ;;  %v568_v38 = vadd.f32 %v504_v19, %v1495_v49  ;;  %v508_v39 = vmul.f32 %v1211_v3, %v443_v20  ;;  %v447_v40 = vsub.f32 %v383_v27, %v319_v26  ;;  %v569_v43 = vadd.f32 %v505_v24, %v1503_v54  ;;  %p974_p11 = pnand %p973_p10, %p969_p6 }
  0x5e   : > { %619 = vst [vmem:[%s1236_s27 + $0x130] sm:$0xff] %v555_v36  ;;  %v321_v36 = vld [vmem:[%s1191_s11 + $0x1e8] sm:$0xff]  ;;  %v509_v44 = vmul.f32 %v1211_v3, %v444_v25  ;;  %v448_v45 = vsub.f32 %v384_v32, %v320_v31  ;;  %v570_v48 = vadd.f32 %v506_v29, %v1511_v59  ;;  %v510_v49 = vmul.f32 %v1211_v3, %v445_v30 }
  0x5f   : > { %620 = vst [vmem:[%s1236_s27 + $0x138] sm:$0xff] %v556_v41  ;;  %v322_v41 = vld [vmem:[%s1191_s11 + $0x1f0] sm:$0xff]  ;;  %v449_v50 = vsub.f32 %v385_v37, %v321_v36  ;;  %v511_v52 = vmul.f32 %v1211_v3, %v446_v35  ;;  %v572_v54 = vadd.f32 %v508_v39, %v315_v6  ;;  %v512_v55 = vmul.f32 %v1211_v3, %v447_v40 }
  0x60   : > { %621 = vst [vmem:[%s1236_s27 + $0x140] sm:$0xff] %v557_v46  ;;  %v323_v46 = vld [vmem:[%s1191_s11 + $0x1f8] sm:$0xff]  ;;  %v450_v53 = vsub.f32 %v386_v42, %v322_v41  ;;  %v573_v57 = vadd.f32 %v509_v44, %v316_v11  ;;  %v513_v58 = vmul.f32 %v1211_v3, %v448_v45  ;;  %v574_v59 = vadd.f32 %v510_v49, %v317_v16 }
  0x61   : > { %622 = vst [vmem:[%s1236_s27 + $0x148] sm:$0xff] %v558_v51  ;;  %v571_v51 = vadd.f32 %v507_v34, %v1519_v0  ;;  %v514_v60 = vmul.f32 %v1211_v3, %v449_v50  ;;  %v576_v63 = vadd.f32 %v512_v55, %v319_v26 }
  0x62   : > { %623 = vst [vmem:[%s1236_s27 + $0x150] sm:$0xff] %v559_v56  ;;  %v451_v56 = vsub.f32 %v387_v47, %v323_v46  ;;  %v515_v62 = vmul.f32 %v1211_v3, %v450_v53  ;;  %v577_v1 = vadd.f32 %v513_v58, %v320_v31 }
  0x63   : > { %624 = vst [vmem:[%s1236_s27 + $0x158] sm:$0xff] %v560_v61  ;;  %v575_v61 = vadd.f32 %v511_v52, %v318_v21 }
  0x64   : > { %625 = vst [vmem:[%s1236_s27 + $0x160] sm:$0xff] %v561_v2  ;;  %v516_v0 = vmul.f32 %v1211_v3, %v451_v56  ;;  %v578_v2 = vadd.f32 %v514_v60, %v321_v36  ;;  %v579_v4 = vadd.f32 %v515_v62, %v322_v41 }
  0x65   : > { %626 = vst [vmem:[%s1236_s27 + $0x168] sm:$0xff] %v562_v8 }
  0x66   : > { %627 = vst [vmem:[%s1236_s27 + $0x170] sm:$0xff] %v563_v13  ;;  %v580_v5 = vadd.f32 %v516_v0, %v323_v46 }
  0x67   : > { %628 = vst [vmem:[%s1236_s27 + $0x178] sm:$0xff] %v564_v18 }
  0x68   : > { %629 = vst [vmem:[%s1236_s27 + $0x180] sm:$0xff] %v565_v23 }
  0x69   : > { %630 = vst [vmem:[%s1236_s27 + $0x188] sm:$0xff] %v566_v28 }
  0x6a   : > { %631 = vst [vmem:[%s1236_s27 + $0x190] sm:$0xff] %v567_v33 }
  0x6b   : > { %632 = vst [vmem:[%s1236_s27 + $0x198] sm:$0xff] %v568_v38 }
  0x6c   : > { %633 = vst [vmem:[%s1236_s27 + $0x1a0] sm:$0xff] %v569_v43 }
  0x6d   : > { %634 = vst [vmem:[%s1236_s27 + $0x1a8] sm:$0xff] %v570_v48 }
  0x6e   : > { %635 = vst [vmem:[%s1236_s27 + $0x1b0] sm:$0xff] %v571_v51 }
  0x6f   : > { %636 = vst [vmem:[%s1236_s27 + $0x1b8] sm:$0xff] %v572_v54 }
  0x70   : > { %637 = vst [vmem:[%s1236_s27 + $0x1c0] sm:$0xff] %v573_v57 }
  0x71   : > { %638 = vst [vmem:[%s1236_s27 + $0x1c8] sm:$0xff] %v574_v59 }
  0x72   : > { %639 = vst [vmem:[%s1236_s27 + $0x1d0] sm:$0xff] %v575_v61 }
  0x73   : > { %640 = vst [vmem:[%s1236_s27 + $0x1d8] sm:$0xff] %v576_v63 }
  0x74   : > { %641 = vst [vmem:[%s1236_s27 + $0x1e0] sm:$0xff] %v577_v1 }
  0x75   : > { %642 = vst [vmem:[%s1236_s27 + $0x1e8] sm:$0xff] %v578_v2 }
  0x76   : > { %643 = vst [vmem:[%s1236_s27 + $0x1f0] sm:$0xff] %v579_v4 }
  0x77   : > { %644 = vst [vmem:[%s1236_s27 + $0x1f8] sm:$0xff] %v580_v5 }
  0x78   : > { %977 = shalt.err (!%p974_p11)
}
  0x79   : > { %s1056_s0 = smov 128   ;;  %s1057_s25 = smov 8  }
  0x7a   : > { %806 = dma.vmem_to_hbm [thread:$0]  (%p1143_p9), %s661_s29, 8192, %s663_s30, %s646_s24, %s1056_s0, %s1056_s0, %s1057_s25  }
  0x7b PF: > { %p820_p13 = scmp.ge.s32.totalorder %s1052_s19, 2  ;;  %s677_s27 = sand.u32 1, %s1024_s12  }
  0x7c   : > { %s678_s10 = scalar_lea.sflag [#allocation4], %s677_s27 }
  0x7d   : > { %p816_p0 = pnand %p820_p13, %p1149_p12 }
  0x7f   : > { %p817_p1 = pneg %p816_p0 }
  0x81   : > { %1019 = dma.done.wait (%p817_p1), %s678_s10, 8192  }
  0x82   : > { %1021 = vsyncadd (%p817_p1), %s678_s10, 4294959104  ;;  %s22_s19 = sadd.s32 1, %s1052_s19   ;;  %s1656_s16 = sld [smem:[#allocation11_spill]] }
  0x83   : > { %p19_p2 = scmp.ge.s32.totalorder %s22_s19, 6   ;;  %s1657_s28 = sld [smem:[#allocation12_spill]] }
  0x84   : > { %s1658_s18 = sld [smem:[#allocation13_spill]]  ;;  %s1659_s12 = smov %s1028_s13 }
  0x85   : > { %s1660_s13 = smov %s1032_s14  ;;  %s1661_s14 = smov %s1158_s6 }
  0x86   : > { %s1662_s15 = smov %s1044_s17  ;;  %21 = sbr.rel (!%p19_p2) target bundleno = 11 (0xb), region = 91 }
  0x89   : > { %s1663_s17 = smov %s1657_s28 }
  0x8b   :  { %684 = vsyncpa [#allocation3], 1 }
  0x8c   :  { %686 = vsyncpa [#allocation3 + $0x1], 1 }
  0x8d   :  { %687 = vsyncpa [#allocation6], 1 }
  0x8e   :  { %689 = vsyncpa [#allocation6 + $0x1], 1 }
  0x8f   :  { %690 = vsyncpa [#allocation4], 1 }
  0x90   :  { %692 = vsyncpa [#allocation4 + $0x1], 1 }

// kernel: sk_layer_forward.2
= control target key start
LH: loop header
LB: loop body
LE: loop exit
PB: predicated region body
PF: predicated region fallthrough
CT: control target
= control target key end

     0   :  { %s1889_s0 = inlined_call_operand.hbm [shape: f32[2,1024,128], index: 0, kind: input, shape index: {}]   ;;  %s1890_s1 = inlined_call_operand.hbm [shape: f32[2,1024,128], index: 1, kind: input, shape index: {}]   ;;  %s1891_s2 = inlined_call_operand.hbm [shape: f32[128,128], index: 2, kind: input, shape index: {}]   ;;  %s1892_s3 = inlined_call_operand.vmem [shape: f32[1,128], index: 3, kind: input, shape index: {}]   ;;  %s1893_s4 = inlined_call_operand.vmem [shape: f32[1,128], index: 4, kind: input, shape index: {}]   ;;  %s1894_s5 = inlined_call_operand.hbm [shape: f32[128,128], index: 5, kind: input, shape index: {}]   ;;  %s1895_s6 = inlined_call_operand.vmem [shape: f32[1,128], index: 6, kind: input, shape index: {}]   ;;  %s1896_s7 = inlined_call_operand.vmem [shape: f32[1,128], index: 7, kind: input, shape index: {}]   ;;  %s1897_s8 = inlined_call_operand.vmem [shape: f32[2,128], index: 8, kind: output, shape index: {}]  }
   0x1   :  { %1899 = sst [smem:[#allocation20_spill]] %s1889_s0 }
   0x2   :  { %13 = vsyncpa [#allocation4], 0 }
   0x3   :  { %15 = vsyncpa [#allocation4 + $0x1], 0 }
   0x4   :  { %16 = vsyncpa [#allocation6], 0 }
   0x5   :  { %18 = vsyncpa [#allocation6 + $0x1], 0 }
   0x6   :  { %19 = vsyncpa [#allocation9], 0  ;;  %s1466_s27 = smov 0   ;;  %s1468_s28 = smov 0  }
   0x7   :  { %s1470_s29 = smov 0   ;;  %s1472_s30 = smov 0  }
   0x8 LB: > { %s1485_s9 = sadd.s32 4294967295, %s1402_s30   ;;  %s1488_s10 = sadd.s32 1, %s1402_s30   ;;  %s1402_s30 = sphi %s1472_s30, %s1908_s30   ;;  %s1398_s29 = sphi %s1470_s29, %s1907_s29   ;;  %s1394_s28 = sphi %s1468_s28, %s1906_s28   ;;  %s1390_s27 = sphi %s1466_s27, %s1905_s27  }
   0x9   : > { %s29_s11 = ssub.s32 %s1402_s30, %s1488_s10  ;;  %s32_s12 = sadd.s32 1, %s1398_s29 }
   0xa   : > { %p30_p0 = scmp.eq.s32.totalorder %s29_s11, 0  ;;  %p39_p1 = scmp.ne.s32.totalorder %s1398_s29, %s1394_s28 }
   0xb   : > { %p40_p2 = scmp.eq.s32.totalorder %s1402_s30, 0  ;;  %p45_p3 = scmp.ne.s32.totalorder %s1394_s28, %s1390_s27 }
   0xc   : > { %s1498_s13 = scalar_select %p30_p0, %s1398_s29, %s32_s12  }
   0xd   : > { %p1500_p4 = por %p40_p2, %p39_p1  ;;  %p46_p5 = scmp.eq.s32.totalorder %s1485_s9, 0 }
   0xe   : > { %p1176_p6 = scmp.ge.s32.totalorder %s1402_s30, 1  ;;  %p229_p7 = scmp.lt.s32.totalorder %s1402_s30, 3 }
   0xf   : > { %p1509_p8 = por %p46_p5, %p45_p3  ;;  %p1177_p9 = scmp.ne.s32.totalorder %s1485_s9, 0 }
  0x10   : > { %p1514_p10 = pnand %p1176_p6, %p229_p7  ;;  %s240_s19 = sshll.u32 %s1891_s2, 4  ;;  %s241_s19 = int_to_ptr.hbm [resolvable:$true] %s240_s19 }
  0x11   : > { %s1404_s20 = smov [#allocation7]   ;;  %s260_s24 = sshll.u32 %s1894_s5, 4  ;;  %s261_s24 = int_to_ptr.hbm [resolvable:$true] %s260_s24 }
  0x12   : > { %p1228_p11 = pneg %p1514_p10  ;;  %s242_s21 = sshll.u32 %s1404_s20, 4  ;;  %s243_s21 = int_to_ptr.vmem [resolvable:$true] %s242_s21 }
  0x13   : > { %s1405_s25 = smov 128   ;;  %s1406_s26 = smov 8  }
  0x14   : > { %p1229_p12 = pnand %p1228_p11, %p46_p5  ;;  %s1407_s27 = smov [#allocation8]  }
  0x15   : > { %s262_s11 = sshll.u32 %s1407_s27, 4  ;;  %p1179_p13 = scmp.ge.s32.totalorder %s1402_s30, 2  ;;  %s263_s11 = int_to_ptr.vmem [resolvable:$true] %s262_s11 }
  0x16   : > { %1231 = dma.hbm_to_vmem [thread:$0]  (!%p1229_p12), %s241_s19, 2048, %s243_s21, [#allocation6], %s1405_s25, %s1405_s25, %s1406_s26  }
  0x17   : > { %1234 = dma.hbm_to_vmem [thread:$0]  (!%p1229_p12), %s261_s24, 2048, %s263_s11, [#allocation9], %s1405_s25, %s1405_s25, %s1406_s26  }
  0x18   : > { %278 = sbr.rel (%p1179_p13) target bundleno = 56 (0x38), region = 40 }
  0x1d   : > { %s282_s12 = sand.u32 1, %s1398_s29   ;;  %s1898_s17 = sshll.u32 %s1402_s30, 9 }
  0x1e   : > { %s1531_s18 = sshll.u32 %s282_s12, 10  ;;  %s1903_s0 = sld [smem:[#allocation20_spill]] }
  0x1f   : > { %s1206_s22 = scalar_select %p1500_p4, [#allocation0], [#allocation14] }
  0x20   : > { %s286_s24 = scalar_lea.vmem [#allocation3], %s1531_s18  ;;  %s1408_s27 = smov 16384  }
  0x21   : > { %s306_s25 = sshll.u32 %s286_s24, 4  ;;  %s296_s26 = sld [smem:[%s1206_s22]]   ;;  %s307_s25 = int_to_ptr.vmem [resolvable:$true] %s306_s25 }
  0x22   : > { %1207 = sst [smem:[#allocation11]] (%p1500_p4), %s1408_s27  ;;  %s1409_s11 = smov 8192  }
  0x23   : > { %1208 = sst [smem:[#allocation11 + $0x1]] (%p1500_p4), %s1409_s11  ;;  %s1410_s19 = smov 64  }
  0x24   : > { %s291_s21 = scalar_lea.hbm %s1903_s0, %s1898_s17  ;;  %1209 = sst [smem:[#allocation11 + $0x2]] (%p1500_p4), %s1410_s19 }
  0x25   : > { %s304_s23 = sshll.u32 %s291_s21, 4  ;;  %s1411_s20 = smov 128   ;;  %s305_s23 = int_to_ptr.hbm [resolvable:$true] %s304_s23 }
  0x26   : > { %1210 = sst [smem:[#allocation11 + $0x3]] (%p1500_p4), %s1411_s20  ;;  %s1412_s22 = smov 8  }
  0x27   : > { %s1183_s21 = sshll.u32 %s296_s26, 26  ;;  %1211 = sst [smem:[#allocation11 + $0x4]] (%p1500_p4), %s1411_s20 }
  0x28   : > { %s1184_s24 = sadd.s32 134217728, %s1183_s21  ;;  %1212 = sst [smem:[#allocation11 + $0x5]] (%p1500_p4), %s1412_s22 }
  0x29   : > { %s283_s17 = scalar_lea.sflag [#allocation4], %s282_s12  ;;  %s1413_s0 = smov [#allocation10]  }
  0x2a   : > { %1213 = dma.general (%p1500_p4), %s305_s23, 16384, %s307_s25, %s283_s17, %s1413_s0, [#allocation11], %s1184_s24, 0  }
  0x2b   : > { %s329_s27 = sand.u32 1, %s1402_s30   ;;  %s1904_s11 = sshll.u32 %s1402_s30, 9 }
  0x2c   : > { %s338_s20 = scalar_lea.hbm %s1890_s1, %s1904_s11  ;;  %s333_s22 = scalar_lea.vmem [#allocation5], %s1531_s18 }
  0x2d   : > { %s1214_s21 = scalar_select %p1500_p4, [#allocation0], [#allocation15] }
  0x2e   : > { %s351_s12 = sshll.u32 %s338_s20, 4  ;;  %s353_s0 = sshll.u32 %s333_s22, 4  ;;  %s352_s12 = int_to_ptr.hbm [resolvable:$true] %s351_s12  ;;  %s354_s0 = int_to_ptr.vmem [resolvable:$true] %s353_s0 }
  0x2f   : > { %s343_s17 = sld [smem:[%s1214_s21]]   ;;  %s1414_s23 = smov 16384  }
  0x30   : > { %1215 = sst [smem:[#allocation13]] (%p1500_p4), %s1414_s23  ;;  %s1415_s30 = smov 8192  }
  0x31   : > { %1216 = sst [smem:[#allocation13 + $0x1]] (%p1500_p4), %s1415_s30  ;;  %s1416_s25 = smov 64  }
  0x32   : > { %1217 = sst [smem:[#allocation13 + $0x2]] (%p1500_p4), %s1416_s25  ;;  %s1417_s24 = smov 128  }
  0x33   : > { %1218 = sst [smem:[#allocation13 + $0x3]] (%p1500_p4), %s1417_s24  ;;  %s1418_s26 = smov 8  }
  0x34   : > { %1219 = sst [smem:[#allocation13 + $0x4]] (%p1500_p4), %s1417_s24  ;;  %s330_s19 = scalar_lea.sflag [#allocation6], %s329_s27 }
  0x35   : > { %s1188_s11 = sshll.u32 %s343_s17, 26  ;;  %1220 = sst [smem:[#allocation13 + $0x5]] (%p1500_p4), %s1418_s26 }
  0x36   : > { %s1189_s18 = sadd.s32 134217728, %s1188_s11  ;;  %s1419_s20 = smov [#allocation12]  }
  0x37   : > { %1221 = dma.general (%p1500_p4), %s352_s12, 16384, %s354_s0, %s330_s19, %s1419_s20, [#allocation13], %s1189_s18, 0  }
  0x38 PF: > { %378 = sbr.rel (%p1514_p10) target bundleno = 549 (0x225), region = 52  ;;  %s380_s21 = sand.u32 (!%p1514_p10), 1, %s1394_s28  }
  0x39   : > { %s1191_s22 = sshll.u32 (!%p1514_p10), %s380_s21, 10  ;;  %s381_s23 = scalar_lea.sflag (!%p1514_p10), [#allocation4], %s380_s21 }
  0x3a   : > { %s1581_s17 = scalar_lea.vmem (!%p1514_p10), [#allocation3], %s1191_s22 }
  0x3d   : > { %1373 = dma.done.wait (%p1509_p8), %s381_s23, 16384  }
  0x3e   : > { %1375 = vsyncadd (%p1509_p8), %s381_s23, 4294950912  ;;  %s390_s14 = sand.u32 1, %s1485_s9   ;;  %s1588_s12 = scalar_lea.vmem [#allocation5], %s1191_s22 }
  0x3f   : > { %s391_s27 = scalar_lea.sflag [#allocation6], %s390_s14 }
  0x40   : > { %1377 = dma.done.wait (%p1509_p8), %s391_s27, 16384  }
  0x41   : > { %1379 = vsyncadd (%p1509_p8), %s391_s27, 4294950912 }
  0x42   : > { %1381 = dma.done.wait (%p46_p5), [#allocation6], 2048  }
  0x43   : > { %1383 = vsyncadd (%p46_p5), [#allocation6], 4294965248 }
  0x44   : > { %1385 = dma.done.wait (%p46_p5), [#allocation9], 2048  }
  0x45   : > { %1387 = vsyncadd (%p46_p5), [#allocation9], 4294965248  ;;  %443 = sbr.rel (%p1177_p9) target bundleno = 76 (0x4c), region = 72 }
  0x4a   : > { %v1420_v0 = vmov 0.0  }
  0x4b   : > { %444 = vst [vmem:[#allocation2] sm:$0x3] %v1420_v0 }
  0x4c PF: > { %v446_v1 = vld [vmem:[%s1581_s17] sm:$0xff]  ;;  %v447_v2 = vld [vmem:[%s1581_s17 + $0x8] sm:$0xff]  ;;  %v448_v7 = vld [vmem:[%s1581_s17 + $0x10] sm:$0xff]  ;;  %vm970_vm0 = vcmask 1041409   ;;  %p1196_p0 = scmp.ne.s32.totalorder %s1485_s9, 1 }
  0x4d   : > { %v574_v3 = vld [vmem:[%s1588_s12] sm:$0xff]  ;;  %v575_v4 = vld [vmem:[%s1588_s12 + $0x8] sm:$0xff]  ;;  %v576_v8 = vld [vmem:[%s1588_s12 + $0x10] sm:$0xff] }
  0x4e   : > { %v702_v5 = vadd.f32 %v574_v3, %v446_v1  ;;  %v703_v6 = vadd.f32 %v575_v4, %v447_v2  ;;  %v704_v9 = vadd.f32 %v576_v8, %v448_v7  ;;  %v449_v11 = vld [vmem:[%s1581_s17 + $0x18] sm:$0xff]  ;;  %v450_v15 = vld [vmem:[%s1581_s17 + $0x20] sm:$0xff]  ;;  %v451_v19 = vld [vmem:[%s1581_s17 + $0x28] sm:$0xff] }
  0x4f   : > { %v577_v12 = vld [vmem:[%s1588_s12 + $0x18] sm:$0xff]  ;;  %v578_v16 = vld [vmem:[%s1588_s12 + $0x20] sm:$0xff]  ;;  %v579_v20 = vld [vmem:[%s1588_s12 + $0x28] sm:$0xff] }
  0x50   : > { %v830_v10 = vadd.f32 %v703_v6, %v702_v5  ;;  %v705_v13 = vadd.f32 %v577_v12, %v449_v11  ;;  %v706_v17 = vadd.f32 %v578_v16, %v450_v15  ;;  %v452_v21 = vld [vmem:[%s1581_s17 + $0x30] sm:$0xff]  ;;  %v510_v22 = vld [vmem:[%s1581_s17 + $0x200] sm:$0xff]  ;;  %v511_v23 = vld [vmem:[%s1581_s17 + $0x208] sm:$0xff]  ;;  %v707_v29 = vadd.f32 %v579_v20, %v451_v19 }
  0x51   : > { %v580_v24 = vld [vmem:[%s1588_s12 + $0x30] sm:$0xff]  ;;  %v638_v25 = vld [vmem:[%s1588_s12 + $0x200] sm:$0xff]  ;;  %v639_v26 = vld [vmem:[%s1588_s12 + $0x208] sm:$0xff] }
  0x52   : > { %v831_v14 = vadd.f32 %v830_v10, %v704_v9  ;;  %v512_v27 = vld [vmem:[%s1581_s17 + $0x210] sm:$0xff]  ;;  %v453_v31 = vld [vmem:[%s1581_s17 + $0x38] sm:$0xff]  ;;  %v766_v33 = vadd.f32 %v638_v25, %v510_v22  ;;  %v767_v34 = vadd.f32 %v639_v26, %v511_v23  ;;  %v708_v37 = vadd.f32 %v580_v24, %v452_v21  ;;  %v454_v38 = vld [vmem:[%s1581_s17 + $0x40] sm:$0xff] }
  0x53   : > { %v640_v28 = vld [vmem:[%s1588_s12 + $0x210] sm:$0xff]  ;;  %v581_v32 = vld [vmem:[%s1588_s12 + $0x38] sm:$0xff]  ;;  %v582_v39 = vld [vmem:[%s1588_s12 + $0x40] sm:$0xff] }
  0x54   : > { %v832_v18 = vadd.f32 %v831_v14, %v705_v13  ;;  %v513_v35 = vld [vmem:[%s1581_s17 + $0x218] sm:$0xff]  ;;  %v768_v40 = vadd.f32 %v640_v28, %v512_v27  ;;  %v514_v41 = vld [vmem:[%s1581_s17 + $0x220] sm:$0xff]  ;;  %v709_v43 = vadd.f32 %v581_v32, %v453_v31  ;;  %v455_v45 = vld [vmem:[%s1581_s17 + $0x48] sm:$0xff]  ;;  %v899_v48 = vadd.f32 %v767_v34, %v766_v33 }
  0x55   : > { %v641_v36 = vld [vmem:[%s1588_s12 + $0x218] sm:$0xff]  ;;  %v642_v42 = vld [vmem:[%s1588_s12 + $0x220] sm:$0xff]  ;;  %v583_v46 = vld [vmem:[%s1588_s12 + $0x48] sm:$0xff]  ;;  %v710_v51 = vadd.f32 %v582_v39, %v454_v38 }
  0x56   : > { %v833_v30 = vadd.f32 %v832_v18, %v706_v17  ;;  %v769_v47 = vadd.f32 %v641_v36, %v513_v35  ;;  %v515_v49 = vld [vmem:[%s1581_s17 + $0x228] sm:$0xff]  ;;  %v456_v53 = vld [vmem:[%s1581_s17 + $0x50] sm:$0xff]  ;;  %v770_v55 = vadd.f32 %v642_v42, %v514_v41  ;;  %v900_v56 = vadd.f32 %v899_v48, %v768_v40  ;;  %v457_v61 = vld [vmem:[%s1581_s17 + $0x58] sm:$0xff] }
  0x57   : > { %v643_v50 = vld [vmem:[%s1588_s12 + $0x228] sm:$0xff]  ;;  %v584_v54 = vld [vmem:[%s1588_s12 + $0x50] sm:$0xff]  ;;  %v711_v59 = vadd.f32 %v583_v46, %v455_v45  ;;  %v585_v62 = vld [vmem:[%s1588_s12 + $0x58] sm:$0xff] }
  0x58   : > { %v834_v44 = vadd.f32 %v833_v30, %v707_v29  ;;  %v516_v57 = vld [vmem:[%s1581_s17 + $0x230] sm:$0xff]  ;;  %v771_v63 = vadd.f32 %v643_v50, %v515_v49  ;;  %v901_v0 = vadd.f32 %v900_v56, %v769_v47  ;;  %v517_v1 = vld [vmem:[%s1581_s17 + $0x238] sm:$0xff]  ;;  %v712_v3 = vadd.f32 %v584_v54, %v456_v53  ;;  %v458_v5 = vld [vmem:[%s1581_s17 + $0x60] sm:$0xff] }
  0x59   : > { %v644_v58 = vld [vmem:[%s1588_s12 + $0x230] sm:$0xff]  ;;  %v645_v2 = vld [vmem:[%s1588_s12 + $0x238] sm:$0xff]  ;;  %v586_v6 = vld [vmem:[%s1588_s12 + $0x60] sm:$0xff]  ;;  %v713_v11 = vadd.f32 %v585_v62, %v457_v61 }
  0x5a   : > { %v835_v52 = vadd.f32 %v834_v44, %v708_v37  ;;  %v772_v7 = vadd.f32 %v644_v58, %v516_v57  ;;  %v902_v8 = vadd.f32 %v901_v0, %v770_v55  ;;  %v518_v9 = vld [vmem:[%s1581_s17 + $0x240] sm:$0xff]  ;;  %v459_v13 = vld [vmem:[%s1581_s17 + $0x68] sm:$0xff]  ;;  %v773_v15 = vadd.f32 %v645_v2, %v517_v1  ;;  %v460_v21 = vld [vmem:[%s1581_s17 + $0x70] sm:$0xff] }
  0x5b   : > { %v646_v10 = vld [vmem:[%s1588_s12 + $0x240] sm:$0xff]  ;;  %v587_v14 = vld [vmem:[%s1588_s12 + $0x68] sm:$0xff]  ;;  %v714_v19 = vadd.f32 %v586_v6, %v458_v5  ;;  %v588_v22 = vld [vmem:[%s1588_s12 + $0x70] sm:$0xff] }
  0x5c   : > { %v836_v60 = vadd.f32 %v835_v52, %v709_v43  ;;  %v903_v16 = vadd.f32 %v902_v8, %v771_v63  ;;  %v519_v17 = vld [vmem:[%s1581_s17 + $0x248] sm:$0xff]  ;;  %v774_v23 = vadd.f32 %v646_v10, %v518_v9  ;;  %v520_v25 = vld [vmem:[%s1581_s17 + $0x250] sm:$0xff]  ;;  %v715_v27 = vadd.f32 %v587_v14, %v459_v13  ;;  %v461_v29 = vld [vmem:[%s1581_s17 + $0x78] sm:$0xff] }
  0x5d   : > { %v647_v18 = vld [vmem:[%s1588_s12 + $0x248] sm:$0xff]  ;;  %v648_v26 = vld [vmem:[%s1588_s12 + $0x250] sm:$0xff]  ;;  %v589_v30 = vld [vmem:[%s1588_s12 + $0x78] sm:$0xff]  ;;  %v716_v35 = vadd.f32 %v588_v22, %v460_v21 }
  0x5e   : > { %v837_v4 = vadd.f32 %v836_v60, %v710_v51  ;;  %v904_v24 = vadd.f32 %v903_v16, %v772_v7  ;;  %v775_v31 = vadd.f32 %v647_v18, %v519_v17  ;;  %v521_v33 = vld [vmem:[%s1581_s17 + $0x258] sm:$0xff]  ;;  %v462_v37 = vld [vmem:[%s1581_s17 + $0x80] sm:$0xff]  ;;  %v776_v39 = vadd.f32 %v648_v26, %v520_v25  ;;  %v463_v45 = vld [vmem:[%s1581_s17 + $0x88] sm:$0xff] }
  0x5f   : > { %v649_v34 = vld [vmem:[%s1588_s12 + $0x258] sm:$0xff]  ;;  %v590_v38 = vld [vmem:[%s1588_s12 + $0x80] sm:$0xff]  ;;  %v717_v43 = vadd.f32 %v589_v30, %v461_v29  ;;  %v591_v46 = vld [vmem:[%s1588_s12 + $0x88] sm:$0xff] }
  0x60   : > { %v838_v12 = vadd.f32 %v837_v4, %v711_v59  ;;  %v905_v32 = vadd.f32 %v904_v24, %v773_v15  ;;  %v522_v41 = vld [vmem:[%s1581_s17 + $0x260] sm:$0xff]  ;;  %v777_v47 = vadd.f32 %v649_v34, %v521_v33  ;;  %v523_v49 = vld [vmem:[%s1581_s17 + $0x268] sm:$0xff]  ;;  %v718_v51 = vadd.f32 %v590_v38, %v462_v37  ;;  %v464_v53 = vld [vmem:[%s1581_s17 + $0x90] sm:$0xff] }
  0x61   : > { %v650_v42 = vld [vmem:[%s1588_s12 + $0x260] sm:$0xff]  ;;  %v651_v50 = vld [vmem:[%s1588_s12 + $0x268] sm:$0xff]  ;;  %v592_v54 = vld [vmem:[%s1588_s12 + $0x90] sm:$0xff]  ;;  %v719_v59 = vadd.f32 %v591_v46, %v463_v45 }
  0x62   : > { %v839_v20 = vadd.f32 %v838_v12, %v712_v3  ;;  %v906_v40 = vadd.f32 %v905_v32, %v774_v23  ;;  %v778_v55 = vadd.f32 %v650_v42, %v522_v41  ;;  %v524_v57 = vld [vmem:[%s1581_s17 + $0x270] sm:$0xff]  ;;  %v465_v61 = vld [vmem:[%s1581_s17 + $0x98] sm:$0xff]  ;;  %v779_v63 = vadd.f32 %v651_v50, %v523_v49  ;;  %v466_v5 = vld [vmem:[%s1581_s17 + $0xa0] sm:$0xff] }
  0x63   : > { %v652_v58 = vld [vmem:[%s1588_s12 + $0x270] sm:$0xff]  ;;  %v593_v62 = vld [vmem:[%s1588_s12 + $0x98] sm:$0xff]  ;;  %v720_v3 = vadd.f32 %v592_v54, %v464_v53  ;;  %v594_v6 = vld [vmem:[%s1588_s12 + $0xa0] sm:$0xff] }
  0x64   : > { %v840_v28 = vadd.f32 %v839_v20, %v713_v11  ;;  %v907_v48 = vadd.f32 %v906_v40, %v775_v31  ;;  %v525_v1 = vld [vmem:[%s1581_s17 + $0x278] sm:$0xff]  ;;  %v780_v7 = vadd.f32 %v652_v58, %v524_v57  ;;  %v526_v9 = vld [vmem:[%s1581_s17 + $0x280] sm:$0xff]  ;;  %v721_v11 = vadd.f32 %v593_v62, %v465_v61  ;;  %v467_v13 = vld [vmem:[%s1581_s17 + $0xa8] sm:$0xff] }
  0x65   : > { %v653_v2 = vld [vmem:[%s1588_s12 + $0x278] sm:$0xff]  ;;  %v654_v10 = vld [vmem:[%s1588_s12 + $0x280] sm:$0xff]  ;;  %v595_v14 = vld [vmem:[%s1588_s12 + $0xa8] sm:$0xff] }
  0x66   : > { %v841_v36 = vadd.f32 %v840_v28, %v714_v19  ;;  %v908_v56 = vadd.f32 %v907_v48, %v776_v39  ;;  %v781_v15 = vadd.f32 %v653_v2, %v525_v1  ;;  %v527_v17 = vld [vmem:[%s1581_s17 + $0x288] sm:$0xff]  ;;  %v722_v19 = vadd.f32 %v594_v6, %v466_v5  ;;  %v468_v21 = vld [vmem:[%s1581_s17 + $0xb0] sm:$0xff]  ;;  %v469_v29 = vld [vmem:[%s1581_s17 + $0xb8] sm:$0xff] }
  0x67   : > { %v655_v18 = vld [vmem:[%s1588_s12 + $0x288] sm:$0xff]  ;;  %v596_v22 = vld [vmem:[%s1588_s12 + $0xb0] sm:$0xff]  ;;  %v782_v23 = vadd.f32 %v654_v10, %v526_v9  ;;  %v597_v30 = vld [vmem:[%s1588_s12 + $0xb8] sm:$0xff] }
  0x68   : > { %v842_v44 = vadd.f32 %v841_v36, %v715_v27  ;;  %v909_v0 = vadd.f32 %v908_v56, %v777_v47  ;;  %v528_v25 = vld [vmem:[%s1581_s17 + $0x290] sm:$0xff]  ;;  %v723_v27 = vadd.f32 %v595_v14, %v467_v13  ;;  %v783_v31 = vadd.f32 %v655_v18, %v527_v17  ;;  %v529_v33 = vld [vmem:[%s1581_s17 + $0x298] sm:$0xff]  ;;  %v470_v37 = vld [vmem:[%s1581_s17 + $0xc0] sm:$0xff] }
  0x69   : > { %v656_v26 = vld [vmem:[%s1588_s12 + $0x290] sm:$0xff]  ;;  %v657_v34 = vld [vmem:[%s1588_s12 + $0x298] sm:$0xff]  ;;  %v598_v38 = vld [vmem:[%s1588_s12 + $0xc0] sm:$0xff] }
  0x6a   : > { %v843_v52 = vadd.f32 %v842_v44, %v716_v35  ;;  %v910_v8 = vadd.f32 %v909_v0, %v778_v55  ;;  %v724_v35 = vadd.f32 %v596_v22, %v468_v21  ;;  %v784_v39 = vadd.f32 %v656_v26, %v528_v25  ;;  %v530_v41 = vld [vmem:[%s1581_s17 + $0x2a0] sm:$0xff]  ;;  %v471_v45 = vld [vmem:[%s1581_s17 + $0xc8] sm:$0xff]  ;;  %v472_v53 = vld [vmem:[%s1581_s17 + $0xd0] sm:$0xff] }
  0x6b   : > { %v658_v42 = vld [vmem:[%s1588_s12 + $0x2a0] sm:$0xff]  ;;  %v599_v46 = vld [vmem:[%s1588_s12 + $0xc8] sm:$0xff]  ;;  %v785_v47 = vadd.f32 %v657_v34, %v529_v33  ;;  %v600_v54 = vld [vmem:[%s1588_s12 + $0xd0] sm:$0xff] }
  0x6c   : > { %v844_v60 = vadd.f32 %v843_v52, %v717_v43  ;;  %v911_v16 = vadd.f32 %v910_v8, %v779_v63  ;;  %v725_v43 = vadd.f32 %v597_v30, %v469_v29  ;;  %v531_v49 = vld [vmem:[%s1581_s17 + $0x2a8] sm:$0xff]  ;;  %v786_v55 = vadd.f32 %v658_v42, %v530_v41  ;;  %v532_v57 = vld [vmem:[%s1581_s17 + $0x2b0] sm:$0xff]  ;;  %v473_v61 = vld [vmem:[%s1581_s17 + $0xd8] sm:$0xff] }
  0x6d   : > { %v659_v50 = vld [vmem:[%s1588_s12 + $0x2a8] sm:$0xff]  ;;  %v660_v58 = vld [vmem:[%s1588_s12 + $0x2b0] sm:$0xff]  ;;  %v601_v62 = vld [vmem:[%s1588_s12 + $0xd8] sm:$0xff] }
  0x6e   : > { %v845_v4 = vadd.f32 %v844_v60, %v718_v51  ;;  %v912_v24 = vadd.f32 %v911_v16, %v780_v7  ;;  %v726_v51 = vadd.f32 %v598_v38, %v470_v37  ;;  %v787_v63 = vadd.f32 %v659_v50, %v531_v49  ;;  %v533_v1 = vld [vmem:[%s1581_s17 + $0x2b8] sm:$0xff]  ;;  %v474_v5 = vld [vmem:[%s1581_s17 + $0xe0] sm:$0xff]  ;;  %v475_v13 = vld [vmem:[%s1581_s17 + $0xe8] sm:$0xff] }
  0x6f   : > { %v661_v2 = vld [vmem:[%s1588_s12 + $0x2b8] sm:$0xff]  ;;  %v602_v6 = vld [vmem:[%s1588_s12 + $0xe0] sm:$0xff]  ;;  %v788_v7 = vadd.f32 %v660_v58, %v532_v57  ;;  %v603_v14 = vld [vmem:[%s1588_s12 + $0xe8] sm:$0xff] }
  0x70   : > { %v846_v12 = vadd.f32 %v845_v4, %v719_v59  ;;  %v913_v32 = vadd.f32 %v912_v24, %v781_v15  ;;  %v727_v59 = vadd.f32 %v599_v46, %v471_v45  ;;  %v534_v9 = vld [vmem:[%s1581_s17 + $0x2c0] sm:$0xff]  ;;  %v789_v15 = vadd.f32 %v661_v2, %v533_v1  ;;  %v535_v17 = vld [vmem:[%s1581_s17 + $0x2c8] sm:$0xff]  ;;  %v476_v21 = vld [vmem:[%s1581_s17 + $0xf0] sm:$0xff] }
  0x71   : > { %v662_v10 = vld [vmem:[%s1588_s12 + $0x2c0] sm:$0xff]  ;;  %v663_v18 = vld [vmem:[%s1588_s12 + $0x2c8] sm:$0xff]  ;;  %v604_v22 = vld [vmem:[%s1588_s12 + $0xf0] sm:$0xff] }
  0x72   : > { %v847_v20 = vadd.f32 %v846_v12, %v720_v3  ;;  %v914_v40 = vadd.f32 %v913_v32, %v782_v23  ;;  %v728_v3 = vadd.f32 %v600_v54, %v472_v53  ;;  %v790_v23 = vadd.f32 %v662_v10, %v534_v9  ;;  %v536_v25 = vld [vmem:[%s1581_s17 + $0x2d0] sm:$0xff]  ;;  %v477_v29 = vld [vmem:[%s1581_s17 + $0xf8] sm:$0xff]  ;;  %v478_v37 = vld [vmem:[%s1581_s17 + $0x100] sm:$0xff] }
  0x73   : > { %v664_v26 = vld [vmem:[%s1588_s12 + $0x2d0] sm:$0xff]  ;;  %v605_v30 = vld [vmem:[%s1588_s12 + $0xf8] sm:$0xff]  ;;  %v606_v38 = vld [vmem:[%s1588_s12 + $0x100] sm:$0xff] }
  0x74   : > { %v848_v28 = vadd.f32 %v847_v20, %v721_v11  ;;  %v915_v48 = vadd.f32 %v914_v40, %v783_v31  ;;  %v729_v11 = vadd.f32 %v601_v62, %v473_v61  ;;  %v791_v31 = vadd.f32 %v663_v18, %v535_v17  ;;  %v537_v33 = vld [vmem:[%s1581_s17 + $0x2d8] sm:$0xff]  ;;  %v538_v41 = vld [vmem:[%s1581_s17 + $0x2e0] sm:$0xff]  ;;  %v479_v45 = vld [vmem:[%s1581_s17 + $0x108] sm:$0xff] }
  0x75   : > { %v665_v34 = vld [vmem:[%s1588_s12 + $0x2d8] sm:$0xff]  ;;  %v666_v42 = vld [vmem:[%s1588_s12 + $0x2e0] sm:$0xff]  ;;  %v607_v46 = vld [vmem:[%s1588_s12 + $0x108] sm:$0xff] }
  0x76   : > { %v849_v36 = vadd.f32 %v848_v28, %v722_v19  ;;  %v916_v56 = vadd.f32 %v915_v48, %v784_v39  ;;  %v730_v19 = vadd.f32 %v602_v6, %v474_v5  ;;  %v792_v39 = vadd.f32 %v664_v26, %v536_v25  ;;  %v539_v49 = vld [vmem:[%s1581_s17 + $0x2e8] sm:$0xff]  ;;  %v480_v53 = vld [vmem:[%s1581_s17 + $0x110] sm:$0xff]  ;;  %v481_v61 = vld [vmem:[%s1581_s17 + $0x118] sm:$0xff] }
  0x77   : > { %v667_v50 = vld [vmem:[%s1588_s12 + $0x2e8] sm:$0xff]  ;;  %v608_v54 = vld [vmem:[%s1588_s12 + $0x110] sm:$0xff]  ;;  %v609_v62 = vld [vmem:[%s1588_s12 + $0x118] sm:$0xff] }
  0x78   : > { %v850_v44 = vadd.f32 %v849_v36, %v723_v27  ;;  %v917_v0 = vadd.f32 %v916_v56, %v785_v47  ;;  %v731_v27 = vadd.f32 %v603_v14, %v475_v13  ;;  %v793_v47 = vadd.f32 %v665_v34, %v537_v33  ;;  %v540_v57 = vld [vmem:[%s1581_s17 + $0x2f0] sm:$0xff]  ;;  %v541_v1 = vld [vmem:[%s1581_s17 + $0x2f8] sm:$0xff]  ;;  %v482_v5 = vld [vmem:[%s1581_s17 + $0x120] sm:$0xff] }
  0x79   : > { %v668_v58 = vld [vmem:[%s1588_s12 + $0x2f0] sm:$0xff]  ;;  %v669_v2 = vld [vmem:[%s1588_s12 + $0x2f8] sm:$0xff]  ;;  %v610_v6 = vld [vmem:[%s1588_s12 + $0x120] sm:$0xff] }
  0x7a   : > { %v851_v52 = vadd.f32 %v850_v44, %v724_v35  ;;  %v918_v8 = vadd.f32 %v917_v0, %v786_v55  ;;  %v732_v35 = vadd.f32 %v604_v22, %v476_v21  ;;  %v794_v55 = vadd.f32 %v666_v42, %v538_v41  ;;  %v542_v9 = vld [vmem:[%s1581_s17 + $0x300] sm:$0xff]  ;;  %v483_v13 = vld [vmem:[%s1581_s17 + $0x128] sm:$0xff]  ;;  %v484_v21 = vld [vmem:[%s1581_s17 + $0x130] sm:$0xff] }
  0x7b   : > { %v670_v10 = vld [vmem:[%s1588_s12 + $0x300] sm:$0xff]  ;;  %v611_v14 = vld [vmem:[%s1588_s12 + $0x128] sm:$0xff]  ;;  %v612_v22 = vld [vmem:[%s1588_s12 + $0x130] sm:$0xff] }
  0x7c   : > { %v852_v60 = vadd.f32 %v851_v52, %v725_v43  ;;  %v919_v16 = vadd.f32 %v918_v8, %v787_v63  ;;  %v733_v43 = vadd.f32 %v605_v30, %v477_v29  ;;  %v795_v63 = vadd.f32 %v667_v50, %v539_v49  ;;  %v543_v17 = vld [vmem:[%s1581_s17 + $0x308] sm:$0xff]  ;;  %v544_v25 = vld [vmem:[%s1581_s17 + $0x310] sm:$0xff]  ;;  %v485_v29 = vld [vmem:[%s1581_s17 + $0x138] sm:$0xff] }
  0x7d   : > { %v671_v18 = vld [vmem:[%s1588_s12 + $0x308] sm:$0xff]  ;;  %v672_v26 = vld [vmem:[%s1588_s12 + $0x310] sm:$0xff]  ;;  %v613_v30 = vld [vmem:[%s1588_s12 + $0x138] sm:$0xff] }
  0x7e   : > { %v853_v4 = vadd.f32 %v852_v60, %v726_v51  ;;  %v920_v24 = vadd.f32 %v919_v16, %v788_v7  ;;  %v734_v51 = vadd.f32 %v606_v38, %v478_v37  ;;  %v796_v7 = vadd.f32 %v668_v58, %v540_v57  ;;  %v545_v33 = vld [vmem:[%s1581_s17 + $0x318] sm:$0xff]  ;;  %v486_v37 = vld [vmem:[%s1581_s17 + $0x140] sm:$0xff]  ;;  %v547_v49 = vld [vmem:[%s1581_s17 + $0x328] sm:$0xff] }
  0x7f   : > { %v673_v34 = vld [vmem:[%s1588_s12 + $0x318] sm:$0xff]  ;;  %v614_v38 = vld [vmem:[%s1588_s12 + $0x140] sm:$0xff]  ;;  %v675_v50 = vld [vmem:[%s1588_s12 + $0x328] sm:$0xff] }
  0x80   : > { %v854_v12 = vadd.f32 %v853_v4, %v727_v59  ;;  %v921_v32 = vadd.f32 %v920_v24, %v789_v15  ;;  %v735_v59 = vadd.f32 %v607_v46, %v479_v45  ;;  %v797_v15 = vadd.f32 %v669_v2, %v541_v1  ;;  %v546_v41 = vld [vmem:[%s1581_s17 + $0x320] sm:$0xff]  ;;  %v487_v45 = vld [vmem:[%s1581_s17 + $0x148] sm:$0xff]  ;;  %v548_v57 = vld [vmem:[%s1581_s17 + $0x330] sm:$0xff] }
  0x81   : > { %v674_v42 = vld [vmem:[%s1588_s12 + $0x320] sm:$0xff]  ;;  %v615_v46 = vld [vmem:[%s1588_s12 + $0x148] sm:$0xff]  ;;  %v676_v58 = vld [vmem:[%s1588_s12 + $0x330] sm:$0xff] }
  0x82   : > { %v855_v20 = vadd.f32 %v854_v12, %v728_v3  ;;  %v922_v40 = vadd.f32 %v921_v32, %v790_v23  ;;  %v736_v3 = vadd.f32 %v608_v54, %v480_v53  ;;  %v798_v23 = vadd.f32 %v670_v10, %v542_v9  ;;  %v488_v53 = vld [vmem:[%s1581_s17 + $0x150] sm:$0xff]  ;;  %v549_v1 = vld [vmem:[%s1581_s17 + $0x338] sm:$0xff]  ;;  %v550_v9 = vld [vmem:[%s1581_s17 + $0x340] sm:$0xff] }
  0x83   : > { %v616_v54 = vld [vmem:[%s1588_s12 + $0x150] sm:$0xff]  ;;  %v677_v2 = vld [vmem:[%s1588_s12 + $0x338] sm:$0xff]  ;;  %v678_v10 = vld [vmem:[%s1588_s12 + $0x340] sm:$0xff] }
  0x84   : > { %v856_v28 = vadd.f32 %v855_v20, %v729_v11  ;;  %v923_v48 = vadd.f32 %v922_v40, %v791_v31  ;;  %v737_v11 = vadd.f32 %v609_v62, %v481_v61  ;;  %v799_v31 = vadd.f32 %v671_v18, %v543_v17  ;;  %v489_v61 = vld [vmem:[%s1581_s17 + $0x158] sm:$0xff]  ;;  %v551_v17 = vld [vmem:[%s1581_s17 + $0x348] sm:$0xff] }
  0x85   : > { %v617_v62 = vld [vmem:[%s1588_s12 + $0x158] sm:$0xff]  ;;  %v679_v18 = vld [vmem:[%s1588_s12 + $0x348] sm:$0xff] }
  0x86   : > { %v857_v36 = vadd.f32 %v856_v28, %v730_v19  ;;  %v924_v56 = vadd.f32 %v923_v48, %v792_v39  ;;  %v738_v19 = vadd.f32 %v610_v6, %v482_v5  ;;  %v800_v39 = vadd.f32 %v672_v26, %v544_v25  ;;  %v490_v5 = vld [vmem:[%s1581_s17 + $0x160] sm:$0xff]  ;;  %v552_v25 = vld [vmem:[%s1581_s17 + $0x350] sm:$0xff] }
  0x87   : > { %v618_v6 = vld [vmem:[%s1588_s12 + $0x160] sm:$0xff]  ;;  %v680_v26 = vld [vmem:[%s1588_s12 + $0x350] sm:$0xff] }
  0x88   : > { %v858_v44 = vadd.f32 %v857_v36, %v731_v27  ;;  %v925_v0 = vadd.f32 %v924_v56, %v793_v47  ;;  %v739_v27 = vadd.f32 %v611_v14, %v483_v13  ;;  %v801_v47 = vadd.f32 %v673_v34, %v545_v33  ;;  %v491_v13 = vld [vmem:[%s1581_s17 + $0x168] sm:$0xff]  ;;  %v553_v33 = vld [vmem:[%s1581_s17 + $0x358] sm:$0xff] }
  0x89   : > { %v619_v14 = vld [vmem:[%s1588_s12 + $0x168] sm:$0xff]  ;;  %v681_v34 = vld [vmem:[%s1588_s12 + $0x358] sm:$0xff] }
  0x8a   : > { %v859_v52 = vadd.f32 %v858_v44, %v732_v35  ;;  %v926_v8 = vadd.f32 %v925_v0, %v794_v55  ;;  %v740_v35 = vadd.f32 %v612_v22, %v484_v21  ;;  %v802_v55 = vadd.f32 %v674_v42, %v546_v41  ;;  %v492_v21 = vld [vmem:[%s1581_s17 + $0x170] sm:$0xff]  ;;  %v554_v41 = vld [vmem:[%s1581_s17 + $0x360] sm:$0xff] }
  0x8b   : > { %v620_v22 = vld [vmem:[%s1588_s12 + $0x170] sm:$0xff]  ;;  %v682_v42 = vld [vmem:[%s1588_s12 + $0x360] sm:$0xff] }
  0x8c   : > { %v860_v60 = vadd.f32 %v859_v52, %v733_v43  ;;  %v927_v16 = vadd.f32 %v926_v8, %v795_v63  ;;  %v741_v43 = vadd.f32 %v613_v30, %v485_v29  ;;  %v803_v63 = vadd.f32 %v675_v50, %v547_v49  ;;  %v493_v29 = vld [vmem:[%s1581_s17 + $0x178] sm:$0xff]  ;;  %v555_v49 = vld [vmem:[%s1581_s17 + $0x368] sm:$0xff] }
  0x8d   : > { %v621_v30 = vld [vmem:[%s1588_s12 + $0x178] sm:$0xff]  ;;  %v683_v50 = vld [vmem:[%s1588_s12 + $0x368] sm:$0xff] }
  0x8e   : > { %v861_v4 = vadd.f32 %v860_v60, %v734_v51  ;;  %v928_v24 = vadd.f32 %v927_v16, %v796_v7  ;;  %v742_v51 = vadd.f32 %v614_v38, %v486_v37  ;;  %v804_v7 = vadd.f32 %v676_v58, %v548_v57  ;;  %v494_v37 = vld [vmem:[%s1581_s17 + $0x180] sm:$0xff]  ;;  %v556_v57 = vld [vmem:[%s1581_s17 + $0x370] sm:$0xff] }
  0x8f   : > { %v622_v38 = vld [vmem:[%s1588_s12 + $0x180] sm:$0xff]  ;;  %v684_v58 = vld [vmem:[%s1588_s12 + $0x370] sm:$0xff] }
  0x90   : > { %v862_v12 = vadd.f32 %v861_v4, %v735_v59  ;;  %v929_v32 = vadd.f32 %v928_v24, %v797_v15  ;;  %v743_v59 = vadd.f32 %v615_v46, %v487_v45  ;;  %v805_v15 = vadd.f32 %v677_v2, %v549_v1  ;;  %v495_v45 = vld [vmem:[%s1581_s17 + $0x188] sm:$0xff]  ;;  %v557_v1 = vld [vmem:[%s1581_s17 + $0x378] sm:$0xff] }
  0x91   : > { %v623_v46 = vld [vmem:[%s1588_s12 + $0x188] sm:$0xff]  ;;  %v685_v2 = vld [vmem:[%s1588_s12 + $0x378] sm:$0xff] }
  0x92   : > { %v863_v20 = vadd.f32 %v862_v12, %v736_v3  ;;  %v930_v40 = vadd.f32 %v929_v32, %v798_v23  ;;  %v744_v3 = vadd.f32 %v616_v54, %v488_v53  ;;  %v806_v23 = vadd.f32 %v678_v10, %v550_v9  ;;  %v496_v53 = vld [vmem:[%s1581_s17 + $0x190] sm:$0xff]  ;;  %v558_v9 = vld [vmem:[%s1581_s17 + $0x380] sm:$0xff] }
  0x93   : > { %v624_v54 = vld [vmem:[%s1588_s12 + $0x190] sm:$0xff]  ;;  %v686_v10 = vld [vmem:[%s1588_s12 + $0x380] sm:$0xff] }
  0x94   : > { %v864_v28 = vadd.f32 %v863_v20, %v737_v11  ;;  %v931_v48 = vadd.f32 %v930_v40, %v799_v31  ;;  %v745_v11 = vadd.f32 %v617_v62, %v489_v61  ;;  %v807_v31 = vadd.f32 %v679_v18, %v551_v17  ;;  %v497_v61 = vld [vmem:[%s1581_s17 + $0x198] sm:$0xff]  ;;  %v559_v17 = vld [vmem:[%s1581_s17 + $0x388] sm:$0xff] }
  0x95   : > { %v625_v62 = vld [vmem:[%s1588_s12 + $0x198] sm:$0xff]  ;;  %v687_v18 = vld [vmem:[%s1588_s12 + $0x388] sm:$0xff] }
  0x96   : > { %v865_v36 = vadd.f32 %v864_v28, %v738_v19  ;;  %v932_v56 = vadd.f32 %v931_v48, %v800_v39  ;;  %v746_v19 = vadd.f32 %v618_v6, %v490_v5  ;;  %v808_v39 = vadd.f32 %v680_v26, %v552_v25  ;;  %v498_v5 = vld [vmem:[%s1581_s17 + $0x1a0] sm:$0xff]  ;;  %v560_v25 = vld [vmem:[%s1581_s17 + $0x390] sm:$0xff] }
  0x97   : > { %v626_v6 = vld [vmem:[%s1588_s12 + $0x1a0] sm:$0xff]  ;;  %v688_v26 = vld [vmem:[%s1588_s12 + $0x390] sm:$0xff] }
  0x98   : > { %v866_v44 = vadd.f32 %v865_v36, %v739_v27  ;;  %v933_v0 = vadd.f32 %v932_v56, %v801_v47  ;;  %v747_v27 = vadd.f32 %v619_v14, %v491_v13  ;;  %v809_v47 = vadd.f32 %v681_v34, %v553_v33  ;;  %v499_v13 = vld [vmem:[%s1581_s17 + $0x1a8] sm:$0xff]  ;;  %v561_v33 = vld [vmem:[%s1581_s17 + $0x398] sm:$0xff] }
  0x99   : > { %v627_v14 = vld [vmem:[%s1588_s12 + $0x1a8] sm:$0xff]  ;;  %v689_v34 = vld [vmem:[%s1588_s12 + $0x398] sm:$0xff] }
  0x9a   : > { %v867_v52 = vadd.f32 %v866_v44, %v740_v35  ;;  %v934_v8 = vadd.f32 %v933_v0, %v802_v55  ;;  %v748_v35 = vadd.f32 %v620_v22, %v492_v21  ;;  %v810_v55 = vadd.f32 %v682_v42, %v554_v41  ;;  %v500_v21 = vld [vmem:[%s1581_s17 + $0x1b0] sm:$0xff]  ;;  %v562_v41 = vld [vmem:[%s1581_s17 + $0x3a0] sm:$0xff] }
  0x9b   : > { %v628_v22 = vld [vmem:[%s1588_s12 + $0x1b0] sm:$0xff]  ;;  %v690_v42 = vld [vmem:[%s1588_s12 + $0x3a0] sm:$0xff] }
  0x9c   : > { %v868_v60 = vadd.f32 %v867_v52, %v741_v43  ;;  %v935_v16 = vadd.f32 %v934_v8, %v803_v63  ;;  %v749_v43 = vadd.f32 %v621_v30, %v493_v29  ;;  %v811_v63 = vadd.f32 %v683_v50, %v555_v49  ;;  %v501_v29 = vld [vmem:[%s1581_s17 + $0x1b8] sm:$0xff]  ;;  %v563_v49 = vld [vmem:[%s1581_s17 + $0x3a8] sm:$0xff] }
  0x9d   : > { %v629_v30 = vld [vmem:[%s1588_s12 + $0x1b8] sm:$0xff]  ;;  %v691_v50 = vld [vmem:[%s1588_s12 + $0x3a8] sm:$0xff] }
  0x9e   : > { %v869_v4 = vadd.f32 %v868_v60, %v742_v51  ;;  %v936_v24 = vadd.f32 %v935_v16, %v804_v7  ;;  %v750_v51 = vadd.f32 %v622_v38, %v494_v37  ;;  %v812_v7 = vadd.f32 %v684_v58, %v556_v57  ;;  %v502_v37 = vld [vmem:[%s1581_s17 + $0x1c0] sm:$0xff]  ;;  %v564_v57 = vld [vmem:[%s1581_s17 + $0x3b0] sm:$0xff] }
  0x9f   : > { %v630_v38 = vld [vmem:[%s1588_s12 + $0x1c0] sm:$0xff]  ;;  %v692_v58 = vld [vmem:[%s1588_s12 + $0x3b0] sm:$0xff] }
  0xa0   : > { %v870_v12 = vadd.f32 %v869_v4, %v743_v59  ;;  %v937_v32 = vadd.f32 %v936_v24, %v805_v15  ;;  %v751_v59 = vadd.f32 %v623_v46, %v495_v45  ;;  %v813_v15 = vadd.f32 %v685_v2, %v557_v1  ;;  %v503_v45 = vld [vmem:[%s1581_s17 + $0x1c8] sm:$0xff]  ;;  %v565_v1 = vld [vmem:[%s1581_s17 + $0x3b8] sm:$0xff] }
  0xa1   : > { %v631_v46 = vld [vmem:[%s1588_s12 + $0x1c8] sm:$0xff]  ;;  %v693_v2 = vld [vmem:[%s1588_s12 + $0x3b8] sm:$0xff] }
  0xa2   : > { %v871_v20 = vadd.f32 %v870_v12, %v744_v3  ;;  %v938_v40 = vadd.f32 %v937_v32, %v806_v23  ;;  %v752_v3 = vadd.f32 %v624_v54, %v496_v53  ;;  %v814_v23 = vadd.f32 %v686_v10, %v558_v9  ;;  %v504_v53 = vld [vmem:[%s1581_s17 + $0x1d0] sm:$0xff]  ;;  %v566_v9 = vld [vmem:[%s1581_s17 + $0x3c0] sm:$0xff] }
  0xa3   : > { %v632_v54 = vld [vmem:[%s1588_s12 + $0x1d0] sm:$0xff]  ;;  %v694_v10 = vld [vmem:[%s1588_s12 + $0x3c0] sm:$0xff] }
  0xa4   : > { %v872_v28 = vadd.f32 %v871_v20, %v745_v11  ;;  %v939_v48 = vadd.f32 %v938_v40, %v807_v31  ;;  %v753_v11 = vadd.f32 %v625_v62, %v497_v61  ;;  %v815_v31 = vadd.f32 %v687_v18, %v559_v17  ;;  %v505_v61 = vld [vmem:[%s1581_s17 + $0x1d8] sm:$0xff]  ;;  %v567_v17 = vld [vmem:[%s1581_s17 + $0x3c8] sm:$0xff] }
  0xa5   : > { %v633_v62 = vld [vmem:[%s1588_s12 + $0x1d8] sm:$0xff]  ;;  %v695_v18 = vld [vmem:[%s1588_s12 + $0x3c8] sm:$0xff] }
  0xa6   : > { %v873_v36 = vadd.f32 %v872_v28, %v746_v19  ;;  %v940_v56 = vadd.f32 %v939_v48, %v808_v39  ;;  %v754_v19 = vadd.f32 %v626_v6, %v498_v5  ;;  %v816_v39 = vadd.f32 %v688_v26, %v560_v25  ;;  %v506_v5 = vld [vmem:[%s1581_s17 + $0x1e0] sm:$0xff]  ;;  %v568_v25 = vld [vmem:[%s1581_s17 + $0x3d0] sm:$0xff] }
  0xa7   : > { %v634_v6 = vld [vmem:[%s1588_s12 + $0x1e0] sm:$0xff]  ;;  %v696_v26 = vld [vmem:[%s1588_s12 + $0x3d0] sm:$0xff] }
  0xa8   : > { %v874_v44 = vadd.f32 %v873_v36, %v747_v27  ;;  %v941_v0 = vadd.f32 %v940_v56, %v809_v47  ;;  %v755_v27 = vadd.f32 %v627_v14, %v499_v13  ;;  %v817_v47 = vadd.f32 %v689_v34, %v561_v33  ;;  %v507_v13 = vld [vmem:[%s1581_s17 + $0x1e8] sm:$0xff]  ;;  %v569_v33 = vld [vmem:[%s1581_s17 + $0x3d8] sm:$0xff] }
  0xa9   : > { %v635_v14 = vld [vmem:[%s1588_s12 + $0x1e8] sm:$0xff]  ;;  %v697_v34 = vld [vmem:[%s1588_s12 + $0x3d8] sm:$0xff] }
  0xaa   : > { %v875_v52 = vadd.f32 %v874_v44, %v748_v35  ;;  %v942_v8 = vadd.f32 %v941_v0, %v810_v55  ;;  %v756_v35 = vadd.f32 %v628_v22, %v500_v21  ;;  %v818_v55 = vadd.f32 %v690_v42, %v562_v41  ;;  %v508_v21 = vld [vmem:[%s1581_s17 + $0x1f0] sm:$0xff] }
  0xab   : > { %v636_v22 = vld [vmem:[%s1588_s12 + $0x1f0] sm:$0xff] }
  0xac   : > { %v876_v60 = vadd.f32 %v875_v52, %v749_v43  ;;  %v943_v16 = vadd.f32 %v942_v8, %v811_v63  ;;  %v757_v43 = vadd.f32 %v629_v30, %v501_v29  ;;  %v819_v63 = vadd.f32 %v691_v50, %v563_v49  ;;  %v509_v29 = vld [vmem:[%s1581_s17 + $0x1f8] sm:$0xff]  ;;  %v572_v50 = vld [vmem:[%s1581_s17 + $0x3f0] sm:$0xff] }
  0xad   : > { %v637_v30 = vld [vmem:[%s1588_s12 + $0x1f8] sm:$0xff] }
  0xae   : > { %v877_v4 = vadd.f32 %v876_v60, %v750_v51  ;;  %v944_v24 = vadd.f32 %v943_v16, %v812_v7  ;;  %v758_v51 = vadd.f32 %v630_v38, %v502_v37  ;;  %v820_v7 = vadd.f32 %v692_v58, %v564_v57 }
  0xaf   : > { %v824_v37 = vadd.f32 %v696_v26, %v568_v25  ;;  %v765_v41 = vadd.f32 %v637_v30, %v509_v29 }
  0xb0   : > { %v878_v12 = vadd.f32 %v877_v4, %v751_v59  ;;  %v945_v32 = vadd.f32 %v944_v24, %v813_v15  ;;  %v759_v59 = vadd.f32 %v631_v46, %v503_v45  ;;  %v821_v15 = vadd.f32 %v693_v2, %v565_v1  ;;  %v571_v45 = vld [vmem:[%s1581_s17 + $0x3e8] sm:$0xff] }
  0xb1   : > { %v699_v46 = vld [vmem:[%s1588_s12 + $0x3e8] sm:$0xff] }
  0xb2   : > { %v879_v20 = vadd.f32 %v878_v12, %v752_v3  ;;  %v946_v40 = vadd.f32 %v945_v32, %v814_v23  ;;  %v760_v3 = vadd.f32 %v632_v54, %v504_v53  ;;  %v822_v23 = vadd.f32 %v694_v10, %v566_v9  ;;  %v445_v10 = vld [vmem:[#allocation2] sm:$0x3] }
  0xb3   : > { %v827_v53 = vadd.f32 %v699_v46, %v571_v45 }
  0xb4   : > { %v880_v28 = vadd.f32 %v879_v20, %v753_v11  ;;  %v947_v48 = vadd.f32 %v946_v40, %v815_v31  ;;  %v761_v11 = vadd.f32 %v633_v62, %v505_v61  ;;  %v823_v31 = vadd.f32 %v695_v18, %v567_v17  ;;  %v698_v40 = vld [vmem:[%s1588_s12 + $0x3e0] sm:$0xff] }
  0xb6   : > { %v881_v36 = vadd.f32 %v880_v28, %v754_v19  ;;  %v948_v56 = vadd.f32 %v947_v48, %v816_v39  ;;  %v762_v19 = vadd.f32 %v634_v6, %v506_v5  ;;  %v570_v39 = vld [vmem:[%s1581_s17 + $0x3e0] sm:$0xff] }
  0xb7   : > { %v826_v48 = vadd.f32 %v698_v40, %v570_v39 }
  0xb8   : > { %v882_v44 = vadd.f32 %v881_v36, %v755_v27  ;;  %v949_v0 = vadd.f32 %v948_v56, %v817_v47  ;;  %v763_v27 = vadd.f32 %v635_v14, %v507_v13  ;;  %v701_v56 = vld [vmem:[%s1588_s12 + $0x3f8] sm:$0xff] }
  0xba   : > { %v883_v52 = vadd.f32 %v882_v44, %v756_v35  ;;  %v950_v8 = vadd.f32 %v949_v0, %v818_v55  ;;  %v764_v35 = vadd.f32 %v636_v22, %v508_v21  ;;  %v573_v55 = vld [vmem:[%s1581_s17 + $0x3f8] sm:$0xff] }
  0xbb   : > { %v829_v61 = vadd.f32 %v701_v56, %v573_v55 }
  0xbc   : > { %v884_v60 = vadd.f32 %v883_v52, %v757_v43  ;;  %v951_v16 = vadd.f32 %v950_v8, %v819_v63  ;;  %v825_v43 = vadd.f32 %v697_v34, %v569_v33 }
  0xbe   : > { %v885_v4 = vadd.f32 %v884_v60, %v758_v51  ;;  %v952_v24 = vadd.f32 %v951_v16, %v820_v7  ;;  %v700_v51 = vld [vmem:[%s1588_s12 + $0x3f0] sm:$0xff] }
  0xbf   : > { %v828_v58 = vadd.f32 %v700_v51, %v572_v50 }
  0xc0   : > { %v886_v12 = vadd.f32 %v885_v4, %v759_v59  ;;  %v953_v32 = vadd.f32 %v952_v24, %v821_v15 }
  0xc2   : > { %v887_v20 = vadd.f32 %v886_v12, %v760_v3  ;;  %v954_v38 = vadd.f32 %v953_v32, %v822_v23 }
  0xc4   : > { %v888_v28 = vadd.f32 %v887_v20, %v761_v11  ;;  %v955_v44 = vadd.f32 %v954_v38, %v823_v31 }
  0xc6   : > { %v889_v36 = vadd.f32 %v888_v28, %v762_v19  ;;  %v956_v49 = vadd.f32 %v955_v44, %v824_v37 }
  0xc8   : > { %v890_v42 = vadd.f32 %v889_v36, %v763_v27  ;;  %v957_v54 = vadd.f32 %v956_v49, %v825_v43 }
  0xca   : > { %v891_v47 = vadd.f32 %v890_v42, %v764_v35  ;;  %v958_v59 = vadd.f32 %v957_v54, %v826_v48 }
  0xcc   : > { %v892_v52 = vadd.f32 %v891_v47, %v765_v41  ;;  %v959_v62 = vadd.f32 %v958_v59, %v827_v53 }
  0xce   : > { %v893_v57 = vrot.slane %v892_v52, 4  ;;  %v960_v0 = vadd.f32 %v959_v62, %v828_v58 }
  0xd0   : > { %v894_v60 = vadd.f32 %v893_v57, %v892_v52  ;;  %v961_v1 = vadd.f32 %v960_v0, %v829_v61 }
  0xd2   : > { %v895_v63 = vrot.slane %v894_v60, 2  ;;  %v962_v3 = vrot.slane %v961_v1, 4 }
  0xd4   : > { %v896_v2 = vadd.f32 %v895_v63, %v894_v60  ;;  %v963_v4 = vadd.f32 %v962_v3, %v961_v1 }
  0xd6   : > { %v897_v5 = vrot.slane %v896_v2, 1  ;;  %v964_v6 = vrot.slane %v963_v4, 2 }
  0xd8   : > { %v965_v7 = vadd.f32 %v964_v6, %v963_v4  ;;  %v898_v8 = vadd.f32 %v897_v5, %v896_v2 }
  0xda   : > { %v966_v9 = vrot.slane %v965_v7, 1 }
  0xdc   : > { %v967_v11 = vadd.f32 %v966_v9, %v965_v7 }
  0xdd   : > { %978 = sbr.rel (%p1196_p0) target bundleno = 549 (0x225), region = 76 }
  0xde   : > { %v971_v12 = vsel %vm970_vm0, %v967_v11, %v898_v8 }
  0xdf   : > { %v973_v13 = vadd.f32 %v971_v12, %v445_v10 }
  0xe1   : > { %974 = vst [vmem:[#allocation2] sm:$0x3] %v973_v13 }
  0xe2   : > { %v996_v14 = vld [vmem:[#allocation7 + $0x78] sm:$0xff]  ;;  %v995_v15 = vld [vmem:[#allocation7 + $0x70] sm:$0xff]  ;;  %v994_v16 = vld [vmem:[#allocation7 + $0x68] sm:$0xff] }
  0xe3   : > { %997 = vmatpush.msra.mxu0 %v996_v14  ;;  %v993_v17 = vld [vmem:[#allocation7 + $0x60] sm:$0xff]  ;;  %v1043_v18 = vld [vmem:[#allocation8 + $0x78] sm:$0xff]  ;;  %v1042_v20 = vld [vmem:[#allocation8 + $0x70] sm:$0xff] }
  0xe4   : > { %v992_v19 = vld [vmem:[#allocation7 + $0x58] sm:$0xff]  ;;  %1044 = vmatpush.msra.mxu1 %v1043_v18  ;;  %v1041_v21 = vld [vmem:[#allocation8 + $0x68] sm:$0xff]  ;;  %v991_v22 = vld [vmem:[#allocation7 + $0x50] sm:$0xff] }
  0xe5   : > { %998 = vmatpush.msra.mxu0 %v995_v15  ;;  %v990_v23 = vld [vmem:[#allocation7 + $0x48] sm:$0xff]  ;;  %v1040_v24 = vld [vmem:[#allocation8 + $0x60] sm:$0xff]  ;;  %v1039_v25 = vld [vmem:[#allocation8 + $0x58] sm:$0xff] }
  0xe6   : > { %1045 = vmatpush.msra.mxu1 %v1042_v20  ;;  %v989_v26 = vld [vmem:[#allocation7 + $0x40] sm:$0xff]  ;;  %v1038_v27 = vld [vmem:[#allocation8 + $0x50] sm:$0xff]  ;;  %v988_v28 = vld [vmem:[#allocation7 + $0x38] sm:$0xff] }
  0xe7   : > { %999 = vmatpush.msra.mxu0 %v994_v16  ;;  %v1037_v29 = vld [vmem:[#allocation8 + $0x48] sm:$0xff]  ;;  %v987_v30 = vld [vmem:[#allocation7 + $0x30] sm:$0xff]  ;;  %v1036_v31 = vld [vmem:[#allocation8 + $0x40] sm:$0xff] }
  0xe8   : > { %1046 = vmatpush.msra.mxu1 %v1041_v21  ;;  %v986_v32 = vld [vmem:[#allocation7 + $0x28] sm:$0xff]  ;;  %v1035_v33 = vld [vmem:[#allocation8 + $0x38] sm:$0xff]  ;;  %v985_v34 = vld [vmem:[#allocation7 + $0x20] sm:$0xff] }
  0xe9   : > { %1000 = vmatpush.msra.mxu0 %v993_v17  ;;  %v1034_v35 = vld [vmem:[#allocation8 + $0x30] sm:$0xff]  ;;  %v984_v36 = vld [vmem:[#allocation7 + $0x18] sm:$0xff]  ;;  %v1033_v37 = vld [vmem:[#allocation8 + $0x28] sm:$0xff] }
  0xea   : > { %1047 = vmatpush.msra.mxu1 %v1040_v24  ;;  %v983_v38 = vld [vmem:[#allocation7 + $0x10] sm:$0xff]  ;;  %v979_v39 = vld [vmem:[#allocation2] sm:$0x3]  ;;  %v1032_v40 = vld [vmem:[#allocation8 + $0x20] sm:$0xff] }
  0xeb   : > { %1001 = vmatpush.msra.mxu0 %v992_v19  ;;  %v982_v41 = vld [vmem:[#allocation7 + $0x8] sm:$0xff]  ;;  %v981_v42 = vld [vmem:[#allocation7] sm:$0xff]  ;;  %v980_v43 = vmul.f32 0.0009765625, %v979_v39  ;;  %v1031_v44 = vld [vmem:[#allocation8 + $0x18] sm:$0xff] }
  0xec   : > { %1048 = vmatpush.msra.mxu1 %v1039_v25  ;;  %v1030_v45 = vld [vmem:[#allocation8 + $0x10] sm:$0xff]  ;;  %v1029_v46 = vld [vmem:[#allocation8 + $0x8] sm:$0xff]  ;;  %v1028_v47 = vld [vmem:[#allocation8] sm:$0xff] }
  0xed   : > { %1002 = vmatpush.msra.mxu0 %v991_v22  ;;  %v1288_v48 = vld [vmem:[%s1892_s3] ss:$0 sm:$0xff] }
  0xee   : > { %1049 = vmatpush.msra.mxu1 %v1038_v27  ;;  %v1289_v49 = vld [vmem:[%s1893_s4] ss:$0 sm:$0xff] }
  0xef   : > { %1003 = vmatpush.msra.mxu0 %v990_v23  ;;  %v1290_v54 = vld [vmem:[%s1895_s6] ss:$0 sm:$0xff] }
  0xf0   : > { %1050 = vmatpush.msra.mxu1 %v1037_v29  ;;  %v1291_v55 = vld [vmem:[%s1896_s7] ss:$0 sm:$0xff] }
  0xf1   : > { %1004 = vmatpush.msra.mxu0 %v989_v26 }
  0xf2   : > { %1051 = vmatpush.msra.mxu1 %v1036_v31 }
  0xf3   : > { %1005 = vmatpush.msra.mxu0 %v988_v28 }
  0xf4   : > { %1052 = vmatpush.msra.mxu1 %v1035_v33 }
  0xf5   : > { %1006 = vmatpush.msra.mxu0 %v987_v30 }
  0xf6   : > { %1053 = vmatpush.msra.mxu1 %v1034_v35 }
  0xf7   : > { %1007 = vmatpush.msra.mxu0 %v986_v32 }
  0xf8   : > { %1054 = vmatpush.msra.mxu1 %v1033_v37 }
  0xf9   : > { %1008 = vmatpush.msra.mxu0 %v985_v34 }
  0xfa   : > { %1055 = vmatpush.msra.mxu1 %v1032_v40 }
  0xfb   : > { %1009 = vmatpush.msra.mxu0 %v984_v36 }
  0xfc   : > { %1056 = vmatpush.msra.mxu1 %v1031_v44 }
  0xfd   : > { %1010 = vmatpush.msra.mxu0 %v983_v38 }
  0xfe   : > { %1057 = vmatpush.msra.mxu1 %v1030_v45 }
  0xff   : > { %1011 = vmatpush.msra.mxu0 %v982_v41 }
 0x100   : > { %1058 = vmatpush.msra.mxu1 %v1029_v46 }
 0x101   : > { %1012 = vmatpush.msra.mxu0 %v981_v42 }
 0x102   : > { %1013 = vmatmul.f32.vlgmr.msra.gmra.mxu0 %v980_v43  ;;  %1059 = vmatpush.msra.mxu1 %v1028_v47 }
 0x17f   : > { %v1014_v50 = vpop.f32.mrf.mxu0 }
 0x180   : > { %v1021_v51 = vmul.f32 %v1288_v48, %v1014_v50 }
 0x182   : > { %v1026_v52 = vadd.f32 %v1289_v49, %v1021_v51 }
 0x184   : > { %v1027_v53 = vmax.f32 %v1026_v52, 0.0 }
 0x186   : > { %1060 = vmatmul.f32.vlgmr.msra.gmra.mxu1 %v1027_v53 }
 0x203   : > { %v1061_v56 = vpop.f32.mrf.mxu1 }
 0x204   : > { %v1068_v57 = vmul.f32 %v1290_v54, %v1061_v56 }
 0x206   : > { %v1073_v58 = vadd.f32 %v1291_v55, %v1068_v57 }
 0x208   : > { %v1197_v59 = vmul.f32 -1.442695, %v1073_v58 }
 0x20a   : > { %1292 = vpow2.f32 %v1197_v59 }
 0x210   : > { %v1293_v60 = vpop.eup %1292 }
 0x211   : > { %v1077_v61 = vadd.f32 1.0, %v1293_v60 }
 0x213   : > { %1294 = vrcp.f32 %v1077_v61  ;;  %v1089_v1 = vand.u32 2147483648, %v1077_v61  ;;  %v1087_v3 = vand.u32 2147483647, %v1077_v61  ;;  %vm1083_vm2 = vweird.f32 %v1077_v61 }
 0x215   : > { %v1090_v5 = vor.u32 1.1754944e-38, %v1089_v1  ;;  %vm1088_vm4 = vcmp.eq.f32.partialorder %v1087_v3, 8.507059e+37 }
 0x219   : > { %v1295_v62 = vpop.eup %1294 }
 0x21a   : > { %v1079_v63 = vmul.f32 %v1295_v62, %v1077_v61  ;;  %vm1084_vm1 = vweird.f32 %v1295_v62 }
 0x21b   : > { %vm1085_vm3 = vmor %vm1083_vm2, %vm1084_vm1 }
 0x21c   : > { %v1080_v0 = vsub.f32 1.0, %v1079_v63 }
 0x21e   : > { %v1081_v2 = vmul.f32 %v1295_v62, %v1080_v0 }
 0x220   : > { %v1082_v4 = vadd.f32 %v1295_v62, %v1081_v2 }
 0x222   : > { %v1086_v6 = vsel %vm1085_vm3, %v1295_v62, %v1082_v4 }
 0x223   : > { %v1091_v7 = vsel %vm1088_vm4, %v1090_v5, %v1086_v6 }
 0x224   : > { %1093 = vst [vmem:[%s1897_s8] sm:$0x3] %v1091_v7 }
 0x225 PF: > { %p22_p1 = scmp.ge.s32.totalorder %s1488_s10, 4   ;;  %s1905_s27 = smov %s1394_s28 }
 0x226   : > { %s1906_s28 = smov %s1398_s29  ;;  %s1907_s29 = smov %s1498_s13 }
 0x227   : > { %s1908_s30 = smov %s1488_s10  ;;  %24 = sbr.rel (!%p22_p1) target bundleno = 8 (0x8), region = 127 }
 0x22c   :  { %1105 = vsyncpa [#allocation4], 1 }
 0x22d   :  { %1107 = vsyncpa [#allocation4 + $0x1], 1 }
 0x22e   :  { %1108 = vsyncpa [#allocation6], 1 }
 0x22f   :  { %1110 = vsyncpa [#allocation6 + $0x1], 1 }
 0x230   :  { %1111 = vsyncpa [#allocation9], 1 }

</bundles_post_ra>
